<compile_context>
chip_gen: v5e
topology: v5e:2x2
jax: 0.10.0
libtpu: 0.0.40
codegen_flags: <defaults>
</compile_context>

<pallas_src>
import math

import jax
import jax.numpy as jnp
import numpy as np
from jax.experimental import pallas as pl
from jax.experimental.pallas import tpu as pltpu  # noqa: F401 (TPU backend)

# ----------------------------- problem sizes --------------------------------
B = 2          # batch
S = 8          # seq_len
D = 32         # d_model
H = 4          # num_heads
DK = D // H    # d_k per head
DFF = 64       # feed-forward inner dim
EPS = 1e-5     # LayerNorm eps (nn.LayerNorm default)
D3 = 3 * D     # fused QKV width (also packed-vector lane width; >= DFF)
G = B * H      # fused attention batch dim


# ------------------------------- kernel --------------------------------------
def encoder_block_kernel(x_ref, maskb_ref, wqkv_ref, wo_ref, w1_ref, w2_ref,
                         vec_ref, out_ref):
    # Single invocation: the whole encoder block (fused QKV, batched attention,
    # out proj, residual+LN, FFN, residual+LN) runs fused, with all operands
    # resident in VMEM.
    # vec_ref rows: 0=b_qkv(3D) 1=b_1(DFF) 2=b_o(D) 3=b_2(D) 4=g1 5=be1 6=g2 7=be2
    x = x_ref[...]                                              # (B*S, D) f32

    # --- fused QKV projection (1/sqrt(d_k) pre-folded into the Q columns) ----
    qkv = (jnp.dot(x, wqkv_ref[...], preferred_element_type=jnp.float32)
           + vec_ref[0:1, :])                                   # (B*S, 3D)

    # --- self-attention, batched over g = B*H --------------------------------
    def to_heads(t):                                            # (B*S, D) -> (G, S, DK)
        return jnp.swapaxes(t.reshape(B, S, H, DK), 1, 2).reshape(G, S, DK)

    q = to_heads(qkv[:, :D])
    k = to_heads(qkv[:, D:2 * D])
    v = to_heads(qkv[:, 2 * D:])

    # (G, S, S) scores in one batched dot (scale already folded into W_q/b_q),
    # additive mask bias (-1e9 on padded keys) broadcast over the query dim.
    scores = jnp.einsum('gqd,gkd->gqk', q, k,
                        preferred_element_type=jnp.float32) + maskb_ref[...]

    # numerically-stable softmax over keys (EUP reciprocal)
    m = jnp.max(scores, axis=-1, keepdims=True)
    e = jnp.exp(scores - m)
    p = e * pl.reciprocal(jnp.sum(e, axis=-1, keepdims=True), approx=True)

    ctx = jnp.einsum('gqk,gkd->gqd', p, v,
                     preferred_element_type=jnp.float32)        # (G, S, DK)
    # repack heads back to lanes -> single (B*S, D) x (D, D) output projection
    ctx = jnp.swapaxes(ctx.reshape(B, H, S, DK), 1, 2).reshape(B * S, D)
    attn = (jnp.dot(ctx, wo_ref[...], preferred_element_type=jnp.float32)
            + vec_ref[2:3, :D])                                 # (B*S, D)

    # --- residual + LayerNorm 1 ----------------------------------------------
    y = x + attn
    mu = jnp.mean(y, axis=-1, keepdims=True)
    var = jnp.mean((y - mu) * (y - mu), axis=-1, keepdims=True)
    y = (y - mu) * jax.lax.rsqrt(var + EPS) * vec_ref[4:5, :D] + vec_ref[5:6, :D]

    # --- feed-forward: relu(y W1 + b1) W2 + b2 --------------------------------
    h1 = jnp.dot(y, w1_ref[...], preferred_element_type=jnp.float32) + vec_ref[1:2, :DFF]
    h1 = jnp.maximum(h1, 0.0)
    ff = jnp.dot(h1, w2_ref[...], preferred_element_type=jnp.float32) + vec_ref[3:4, :D]

    # --- residual + LayerNorm 2 ----------------------------------------------
    z = y + ff
    mu2 = jnp.mean(z, axis=-1, keepdims=True)
    var2 = jnp.mean((z - mu2) * (z - mu2), axis=-1, keepdims=True)
    z = (z - mu2) * jax.lax.rsqrt(var2 + EPS) * vec_ref[6:7, :D] + vec_ref[7:8, :D]

    out_ref[...] = z.astype(out_ref.dtype)                      # (B*S, D)


# ------------------------------- wrapper --------------------------------------
@jax.jit
def encoder_block(x, mask, params):
    (wq, bq, wk, bk, wv, bv, wo, bo, w1, b1, w2, b2, g1, be1, g2, be2) = params

    scale = 1.0 / math.sqrt(DK)
    w_qkv = jnp.concatenate([wq * scale, wk, wv], axis=1)       # (D, 3D)
    b_qkv = jnp.concatenate([bq * scale, bk, bv], axis=1)       # (1, 3D)

    # additive mask bias, replicated over heads: (B,1,S) -> (B*H, 1, S)
    mask_bias = jnp.repeat(mask * jnp.float32(-1e9), H, axis=0)

    def pad(v):                                                 # (1,n) -> (1,3D)
        return jnp.pad(v, ((0, 0), (0, D3 - v.shape[1])))

    vecs = jnp.concatenate(
        [b_qkv, pad(b1), pad(bo), pad(b2), pad(g1), pad(be1), pad(g2), pad(be2)],
        axis=0)                                                 # (8, 3D)

    out_flat = pl.pallas_call(
        encoder_block_kernel,
        out_shape=jax.ShapeDtypeStruct((B * S, D), jnp.float32),
    )(x.reshape(B * S, D), mask_bias, w_qkv, wo, w1, w2, vecs)
    return out_flat.reshape(B, S, D)                            # metadata-only


# --------------------------- pure-JAX reference --------------------------------
def ref_encoder_block(x, mask, params):
    (wq, bq, wk, bk, wv, bv, wo, bo, w1, b1, w2, b2, g1, be1, g2, be2) = params
    q = x @ wq + bq
    k = x @ wk + bk
    v = x @ wv + bv
    q = q.reshape(B, S, H, DK).transpose(0, 2, 1, 3)
    k = k.reshape(B, S, H, DK).transpose(0, 2, 1, 3)
    v = v.reshape(B, S, H, DK).transpose(0, 2, 1, 3)
    scores = jnp.einsum("bhqd,bhkd->bhqk", q, k) / math.sqrt(DK)
    m4 = mask[:, :, None, :]                      # (B,1,1,S)
    scores = jnp.where(m4 > 0.5, -1e9, scores)
    p = jax.nn.softmax(scores, axis=-1)
    ctx = jnp.einsum("bhqk,bhkd->bhqd", p, v).transpose(0, 2, 1, 3).reshape(B, S, D)
    attn_out = ctx @ wo + bo

    def ln(t, g, be):
        mu = t.mean(-1, keepdims=True)
        var = ((t - mu) ** 2).mean(-1, keepdims=True)
        return (t - mu) * jax.lax.rsqrt(var + EPS) * g + be

    y = ln(x + attn_out, g1, be1)
    ff = jnp.maximum(y @ w1 + b1, 0.0) @ w2 + b2
    return ln(y + ff, g2, be2)


# --------------------------------- main ----------------------------------------
if __name__ == "__main__":
    key = jax.random.PRNGKey(0)
    keys = jax.random.split(key, 16)

    def init(k, shape, scale=0.05):
        return (scale * jax.random.normal(k, shape)).astype(jnp.float32)

    params = (
        init(keys[0], (D, D)), init(keys[1], (1, D)),     # W_q, b_q ([in,out])
        init(keys[2], (D, D)), init(keys[3], (1, D)),     # W_k, b_k
        init(keys[4], (D, D)), init(keys[5], (1, D)),     # W_v, b_v
        init(keys[6], (D, D)), init(keys[7], (1, D)),     # W_o, b_o
        init(keys[8], (D, DFF)), init(keys[9], (1, DFF)), # W_1, b_1
        init(keys[10], (DFF, D)), init(keys[11], (1, D)), # W_2, b_2
        jnp.ones((1, D), jnp.float32), jnp.zeros((1, D), jnp.float32),  # LN1
        jnp.ones((1, D), jnp.float32), jnp.zeros((1, D), jnp.float32),  # LN2
    )

    x = jax.random.normal(keys[12], (B, S, D), dtype=jnp.float32)

    # padding mask: [B, 1, S], 1.0 == masked key position (PyTorch mask.bool() True)
    mask = jnp.zeros((B, 1, S), jnp.float32)
    mask = mask.at[1, 0, S - 2:].set(1.0)      # second batch: last 2 keys padded

    out = encoder_block(x, mask, params)
    out = jax.block_until_ready(out)

    ref = ref_encoder_block(x, mask, params)
    # tolerance covers the approx (EUP) reciprocal in the softmax denominator
    # and the additive -1e9 mask (equivalent to masked_fill while |scores|<<1e9)
    np.testing.assert_allclose(np.asarray(out), np.asarray(ref), rtol=2e-3, atol=2e-3)

    # TODO(synk): attention weights (return_attn_weights=True) and dropout RNG
    # are not emitted; forward defaults to return_weights=False and eval-mode
    # dropout (identity), which this kernel reproduces.
    print("KERNEL_OK")
</pallas_src>

<mosaic_0001>
module attributes {stable_mosaic.version = 11 : i64} {
  func.func @encoder_block_kernel(%arg0: memref<16x32xf32, #tpu.memory_space<vmem>>, %arg1: memref<8x1x8xf32, #tpu.memory_space<vmem>>, %arg2: memref<32x96xf32, #tpu.memory_space<vmem>>, %arg3: memref<32x32xf32, #tpu.memory_space<vmem>>, %arg4: memref<32x64xf32, #tpu.memory_space<vmem>>, %arg5: memref<64x32xf32, #tpu.memory_space<vmem>>, %arg6: memref<8x96xf32, #tpu.memory_space<vmem>>, %arg7: memref<16x32xf32, #tpu.memory_space<vmem>>) attributes {dimension_semantics = [], scalar_prefetch = 0 : i64, scratch_operands = 0 : i64, tpu.core_type = #tpu.core_type<tc>} {
    %c0 = arith.constant 0 : index
    %c0_0 = arith.constant 0 : index
    %0 = vector.load %arg0[%c0, %c0_0] : memref<16x32xf32, #tpu.memory_space<vmem>>, vector<16x32xf32>
    %c0_1 = arith.constant 0 : index
    %c0_2 = arith.constant 0 : index
    %1 = vector.load %arg2[%c0_1, %c0_2] : memref<32x96xf32, #tpu.memory_space<vmem>>, vector<32x96xf32>
    %cst = arith.constant dense<0.000000e+00> : vector<16x96xf32>
    %2 = tpu.matmul %0, %1, %cst {dimension_numbers = #tpu.dot_dimension_numbers<[1], [0], [0], [1], [0, 0, 1, 1], [], []>} : vector<16x32xf32>, vector<32x96xf32>, vector<16x96xf32> -> vector<16x96xf32>
    %c0_3 = arith.constant 0 : index
    %c0_4 = arith.constant 0 : index
    %3 = vector.load %arg6[%c0_3, %c0_4] : memref<8x96xf32, #tpu.memory_space<vmem>>, vector<1x96xf32>
    %4 = vector.broadcast %3 : vector<1x96xf32> to vector<16x96xf32>
    %5 = arith.addf %2, %4 : vector<16x96xf32>
    %6 = vector.extract_strided_slice %5 {offsets = [0, 0], sizes = [16, 32], strides = [1, 1]} : vector<16x96xf32> to vector<16x32xf32>
    %7 = vector.shape_cast %6 : vector<16x32xf32> to vector<2x8x4x8xf32>
    %8 = tpu.transpose %7, [0, 2, 1, 3] : vector<2x8x4x8xf32> -> vector<2x4x8x8xf32>
    %9 = vector.shape_cast %8 : vector<2x4x8x8xf32> to vector<8x8x8xf32>
    %10 = vector.extract_strided_slice %5 {offsets = [0, 32], sizes = [16, 32], strides = [1, 1]} : vector<16x96xf32> to vector<16x32xf32>
    %11 = vector.shape_cast %10 : vector<16x32xf32> to vector<2x8x4x8xf32>
    %12 = tpu.transpose %11, [0, 2, 1, 3] : vector<2x8x4x8xf32> -> vector<2x4x8x8xf32>
    %13 = vector.shape_cast %12 : vector<2x4x8x8xf32> to vector<8x8x8xf32>
    %14 = vector.extract_strided_slice %5 {offsets = [0, 64], sizes = [16, 32], strides = [1, 1]} : vector<16x96xf32> to vector<16x32xf32>
    %15 = vector.shape_cast %14 : vector<16x32xf32> to vector<2x8x4x8xf32>
    %16 = tpu.transpose %15, [0, 2, 1, 3] : vector<2x8x4x8xf32> -> vector<2x4x8x8xf32>
    %17 = vector.shape_cast %16 : vector<2x4x8x8xf32> to vector<8x8x8xf32>
    "tpu.trace_start"() <{level = 10 : i32, message = "gqd,gkd->gqk"}> : () -> ()
    %cst_5 = arith.constant dense<0.000000e+00> : vector<8x8x8xf32>
    %18 = tpu.matmul %9, %13, %cst_5 {dimension_numbers = #tpu.dot_dimension_numbers<[2], [2], [1], [1], [0, 0, 0, 1, 1, 1], [0], [0]>} : vector<8x8x8xf32>, vector<8x8x8xf32>, vector<8x8x8xf32> -> vector<8x8x8xf32>
    "tpu.trace_stop"() : () -> ()
    %c0_6 = arith.constant 0 : index
    %c0_7 = arith.constant 0 : index
    %c0_8 = arith.constant 0 : index
    %19 = vector.load %arg1[%c0_6, %c0_7, %c0_8] : memref<8x1x8xf32, #tpu.memory_space<vmem>>, vector<8x1x8xf32>
    %20 = vector.broadcast %19 : vector<8x1x8xf32> to vector<8x8x8xf32>
    %21 = arith.addf %18, %20 : vector<8x8x8xf32>
    %cst_9 = arith.constant dense<0xFF800000> : vector<8x8xf32>
    %22 = vector.multi_reduction <maximumf>, %21, %cst_9 [2] : vector<8x8x8xf32> to vector<8x8xf32>
    %23 = vector.shape_cast %22 : vector<8x8xf32> to vector<8x8x1xf32>
    %24 = vector.broadcast %23 : vector<8x8x1xf32> to vector<8x8x8xf32>
    %25 = arith.subf %21, %24 : vector<8x8x8xf32>
    %26 = math.exp %25 : vector<8x8x8xf32>
    %cst_10 = arith.constant dense<0.000000e+00> : vector<8x8xf32>
    %27 = vector.multi_reduction <add>, %26, %cst_10 [2] : vector<8x8x8xf32> to vector<8x8xf32>
    %28 = vector.shape_cast %27 : vector<8x8xf32> to vector<8x8x1xf32>
    %29 = tpu.reciprocal %28 {approx = true} : vector<8x8x1xf32> -> vector<8x8x1xf32>
    %30 = vector.broadcast %29 : vector<8x8x1xf32> to vector<8x8x8xf32>
    %31 = arith.mulf %26, %30 : vector<8x8x8xf32>
    "tpu.trace_start"() <{level = 10 : i32, message = "gqk,gkd->gqd"}> : () -> ()
    %cst_11 = arith.constant dense<0.000000e+00> : vector<8x8x8xf32>
    %32 = tpu.matmul %31, %17, %cst_11 {dimension_numbers = #tpu.dot_dimension_numbers<[2], [1], [1], [2], [0, 0, 0, 1, 1, 2], [0], [0]>} : vector<8x8x8xf32>, vector<8x8x8xf32>, vector<8x8x8xf32> -> vector<8x8x8xf32>
    "tpu.trace_stop"() : () -> ()
    %33 = vector.shape_cast %32 : vector<8x8x8xf32> to vector<2x4x8x8xf32>
    %34 = tpu.transpose %33, [0, 2, 1, 3] : vector<2x4x8x8xf32> -> vector<2x8x4x8xf32>
    %35 = vector.shape_cast %34 : vector<2x8x4x8xf32> to vector<16x32xf32>
    %c0_12 = arith.constant 0 : index
    %c0_13 = arith.constant 0 : index
    %36 = vector.load %arg3[%c0_12, %c0_13] : memref<32x32xf32, #tpu.memory_space<vmem>>, vector<32x32xf32>
    %cst_14 = arith.constant dense<0.000000e+00> : vector<16x32xf32>
    %37 = tpu.matmul %35, %36, %cst_14 {dimension_numbers = #tpu.dot_dimension_numbers<[1], [0], [0], [1], [0, 0, 1, 1], [], []>} : vector<16x32xf32>, vector<32x32xf32>, vector<16x32xf32> -> vector<16x32xf32>
    %c2 = arith.constant 2 : index
    %c0_15 = arith.constant 0 : index
    %38 = vector.load %arg6[%c2, %c0_15] : memref<8x96xf32, #tpu.memory_space<vmem>>, vector<1x32xf32>
    %39 = vector.broadcast %38 : vector<1x32xf32> to vector<16x32xf32>
    %40 = arith.addf %37, %39 : vector<16x32xf32>
    %41 = arith.addf %0, %40 : vector<16x32xf32>
    %cst_16 = arith.constant dense<0.000000e+00> : vector<16xf32>
    %42 = vector.multi_reduction <add>, %41, %cst_16 [1] : vector<16x32xf32> to vector<16xf32>
    %43 = vector.shape_cast %42 : vector<16xf32> to vector<16x1xf32>
    %cst_17 = arith.constant 3.200000e+01 : f32
    %44 = vector.broadcast %cst_17 : f32 to vector<16x1xf32>
    %45 = arith.divf %43, %44 : vector<16x1xf32>
    %46 = vector.broadcast %45 : vector<16x1xf32> to vector<16x32xf32>
    %47 = arith.subf %41, %46 : vector<16x32xf32>
    %48 = vector.broadcast %45 : vector<16x1xf32> to vector<16x32xf32>
    %49 = arith.subf %41, %48 : vector<16x32xf32>
    %50 = arith.mulf %47, %49 : vector<16x32xf32>
    %cst_18 = arith.constant dense<0.000000e+00> : vector<16xf32>
    %51 = vector.multi_reduction <add>, %50, %cst_18 [1] : vector<16x32xf32> to vector<16xf32>
    %52 = vector.shape_cast %51 : vector<16xf32> to vector<16x1xf32>
    %cst_19 = arith.constant 3.200000e+01 : f32
    %53 = vector.broadcast %cst_19 : f32 to vector<16x1xf32>
    %54 = arith.divf %52, %53 : vector<16x1xf32>
    %55 = vector.broadcast %45 : vector<16x1xf32> to vector<16x32xf32>
    %56 = arith.subf %41, %55 : vector<16x32xf32>
    %cst_20 = arith.constant 9.99999974E-6 : f32
    %57 = vector.broadcast %cst_20 : f32 to vector<16x1xf32>
    %58 = arith.addf %54, %57 : vector<16x1xf32>
    %59 = math.rsqrt %58 : vector<16x1xf32>
    %60 = vector.broadcast %59 : vector<16x1xf32> to vector<16x32xf32>
    %61 = arith.mulf %56, %60 : vector<16x32xf32>
    %c4 = arith.constant 4 : index
    %c0_21 = arith.constant 0 : index
    %62 = vector.load %arg6[%c4, %c0_21] : memref<8x96xf32, #tpu.memory_space<vmem>>, vector<1x32xf32>
    %63 = vector.broadcast %62 : vector<1x32xf32> to vector<16x32xf32>
    %64 = arith.mulf %61, %63 : vector<16x32xf32>
    %c5 = arith.constant 5 : index
    %c0_22 = arith.constant 0 : index
    %65 = vector.load %arg6[%c5, %c0_22] : memref<8x96xf32, #tpu.memory_space<vmem>>, vector<1x32xf32>
    %66 = vector.broadcast %65 : vector<1x32xf32> to vector<16x32xf32>
    %67 = arith.addf %64, %66 : vector<16x32xf32>
    %c0_23 = arith.constant 0 : index
    %c0_24 = arith.constant 0 : index
    %68 = vector.load %arg4[%c0_23, %c0_24] : memref<32x64xf32, #tpu.memory_space<vmem>>, vector<32x64xf32>
    %cst_25 = arith.constant dense<0.000000e+00> : vector<16x64xf32>
    %69 = tpu.matmul %67, %68, %cst_25 {dimension_numbers = #tpu.dot_dimension_numbers<[1], [0], [0], [1], [0, 0, 1, 1], [], []>} : vector<16x32xf32>, vector<32x64xf32>, vector<16x64xf32> -> vector<16x64xf32>
    %c1 = arith.constant 1 : index
    %c0_26 = arith.constant 0 : index
    %70 = vector.load %arg6[%c1, %c0_26] : memref<8x96xf32, #tpu.memory_space<vmem>>, vector<1x64xf32>
    %71 = vector.broadcast %70 : vector<1x64xf32> to vector<16x64xf32>
    %72 = arith.addf %69, %71 : vector<16x64xf32>
    %cst_27 = arith.constant 0.000000e+00 : f32
    %73 = vector.broadcast %cst_27 : f32 to vector<16x64xf32>
    %74 = arith.maximumf %72, %73 : vector<16x64xf32>
    %c0_28 = arith.constant 0 : index
    %c0_29 = arith.constant 0 : index
    %75 = vector.load %arg5[%c0_28, %c0_29] : memref<64x32xf32, #tpu.memory_space<vmem>>, vector<64x32xf32>
    %cst_30 = arith.constant dense<0.000000e+00> : vector<16x32xf32>
    %76 = tpu.matmul %74, %75, %cst_30 {dimension_numbers = #tpu.dot_dimension_numbers<[1], [0], [0], [1], [0, 0, 1, 1], [], []>} : vector<16x64xf32>, vector<64x32xf32>, vector<16x32xf32> -> vector<16x32xf32>
    %c3 = arith.constant 3 : index
    %c0_31 = arith.constant 0 : index
    %77 = vector.load %arg6[%c3, %c0_31] : memref<8x96xf32, #tpu.memory_space<vmem>>, vector<1x32xf32>
    %78 = vector.broadcast %77 : vector<1x32xf32> to vector<16x32xf32>
    %79 = arith.addf %76, %78 : vector<16x32xf32>
    %80 = arith.addf %67, %79 : vector<16x32xf32>
    %cst_32 = arith.constant dense<0.000000e+00> : vector<16xf32>
    %81 = vector.multi_reduction <add>, %80, %cst_32 [1] : vector<16x32xf32> to vector<16xf32>
    %82 = vector.shape_cast %81 : vector<16xf32> to vector<16x1xf32>
    %cst_33 = arith.constant 3.200000e+01 : f32
    %83 = vector.broadcast %cst_33 : f32 to vector<16x1xf32>
    %84 = arith.divf %82, %83 : vector<16x1xf32>
    %85 = vector.broadcast %84 : vector<16x1xf32> to vector<16x32xf32>
    %86 = arith.subf %80, %85 : vector<16x32xf32>
    %87 = vector.broadcast %84 : vector<16x1xf32> to vector<16x32xf32>
    %88 = arith.subf %80, %87 : vector<16x32xf32>
    %89 = arith.mulf %86, %88 : vector<16x32xf32>
    %cst_34 = arith.constant dense<0.000000e+00> : vector<16xf32>
    %90 = vector.multi_reduction <add>, %89, %cst_34 [1] : vector<16x32xf32> to vector<16xf32>
    %91 = vector.shape_cast %90 : vector<16xf32> to vector<16x1xf32>
    %cst_35 = arith.constant 3.200000e+01 : f32
    %92 = vector.broadcast %cst_35 : f32 to vector<16x1xf32>
    %93 = arith.divf %91, %92 : vector<16x1xf32>
    %94 = vector.broadcast %84 : vector<16x1xf32> to vector<16x32xf32>
    %95 = arith.subf %80, %94 : vector<16x32xf32>
    %cst_36 = arith.constant 9.99999974E-6 : f32
    %96 = vector.broadcast %cst_36 : f32 to vector<16x1xf32>
    %97 = arith.addf %93, %96 : vector<16x1xf32>
    %98 = math.rsqrt %97 : vector<16x1xf32>
    %99 = vector.broadcast %98 : vector<16x1xf32> to vector<16x32xf32>
    %100 = arith.mulf %95, %99 : vector<16x32xf32>
    %c6 = arith.constant 6 : index
    %c0_37 = arith.constant 0 : index
    %101 = vector.load %arg6[%c6, %c0_37] : memref<8x96xf32, #tpu.memory_space<vmem>>, vector<1x32xf32>
    %102 = vector.broadcast %101 : vector<1x32xf32> to vector<16x32xf32>
    %103 = arith.mulf %100, %102 : vector<16x32xf32>
    %c7 = arith.constant 7 : index
    %c0_38 = arith.constant 0 : index
    %104 = vector.load %arg6[%c7, %c0_38] : memref<8x96xf32, #tpu.memory_space<vmem>>, vector<1x32xf32>
    %105 = vector.broadcast %104 : vector<1x32xf32> to vector<16x32xf32>
    %106 = arith.addf %103, %105 : vector<16x32xf32>
    %c0_39 = arith.constant 0 : index
    %c0_40 = arith.constant 0 : index
    %107 = vector.load %arg7[%c0_39, %c0_40] : memref<16x32xf32, #tpu.memory_space<vmem>>, vector<16x32xf32>
    tpu.vector_store %arg7[%c0_39, %c0_40], %106 {strides = array<i32>} : memref<16x32xf32, #tpu.memory_space<vmem>>, vector<16x32xf32>,
    return
  }
}

</mosaic_0001>

<bundles_post_ra>
// kernel: encoder_block.1
= control target key start
LH: loop header
LB: loop body
LE: loop exit
PB: predicated region body
PF: predicated region fallthrough
CT: control target
= control target key end

     0   :  { %vm35_vm0 = vcmask 261120   ;;  %s2661_s0 = inlined_call_operand.vmem [shape: f32[16,32], index: 0, kind: input, shape index: {}]   ;;  %s2662_s1 = inlined_call_operand.vmem [shape: f32[8,1,8], index: 1, kind: input, shape index: {}]   ;;  %s2663_s2 = inlined_call_operand.vmem [shape: f32[32,96], index: 2, kind: input, shape index: {}]   ;;  %s2664_s3 = inlined_call_operand.vmem [shape: f32[32,32], index: 3, kind: input, shape index: {}]   ;;  %s2665_s4 = inlined_call_operand.vmem [shape: f32[32,64], index: 4, kind: input, shape index: {}]   ;;  %s2666_s5 = inlined_call_operand.vmem [shape: f32[64,32], index: 5, kind: input, shape index: {}]   ;;  %s2667_s6 = inlined_call_operand.vmem [shape: f32[8,96], index: 6, kind: input, shape index: {}]   ;;  %s2668_s7 = inlined_call_operand.hbm [shape: f32[16,32], index: 7, kind: output, shape index: {}]  }
   0x1   :  { %v32_v0 = vld [vmem:[%s2663_s2 + $0x18] sm:$0xff]  ;;  %v31_v1 = vld [vmem:[%s2663_s2 + $0x10] sm:$0xff]  ;;  %v30_v2 = vld [vmem:[%s2663_s2 + $0x8] sm:$0xff] }
   0x2   :  { %54 = vmatpush.msra.mxu0 %v32_v0  ;;  %v29_v3 = vld [vmem:[%s2663_s2] sm:$0xff] }
   0x3   :  { %v27_v4 = vld [vmem:[%s2661_s0] sm:$0xff] }
   0x4   :  { %55 = vmatpush.msra.mxu0 %v31_v1 }
   0x6   :  { %56 = vmatpush.msra.mxu0 %v30_v2 }
   0x8   :  { %57 = vmatpush.msra.mxu0 %v29_v3 }
   0x9   :  { %1806 = vmatmul.msk.f32.vlgmr.msra.gmra.mxu0 %vm35_vm0, %v27_v4 }
   0xa   :  { %12 = vsyncpa [#allocation3], 0  ;;  %v28_v5 = vld [vmem:[%s2661_s0 + $0x8] sm:$0xff]  ;;  %v1871_v6 = vld [vmem:[%s2667_s6] ss:$0 sm:$0xff]  ;;  %s1957_s2 = smov 104  }
   0xb   :  { %s1958_s15 = smov 120   ;;  %s1959_s16 = smov 112   ;;  %v1961_v13 = vmov 1983009808   ;;  %vm86_vm1 = vcmask 1047556   ;;  %vm826_vm2 = vcmask 64512  }
   0xc   :  { %s1960_s17 = smov 96   ;;  %v91_v14 = vunpack.c.l.s4 %v1961_v13  ;;  %v1962_v22 = vmov 1934713408   ;;  %s1963_s18 = smov 64   ;;  %vm1553_vm3 = vcmask 130048   ;;  %vm1556_vm4 = vcmask 195584  }
   0xd   :  { %v115_v23 = vunpack.c.l.s4 %v1962_v22  ;;  %s1965_s12 = smov 16   ;;  %s1966_s13 = smov 8   ;;  %vm1702_vm12 = vcmask 523264  }
   0xe   :  { %v2048_v19 = vunpack.c.0.s8 %v91_v14 }
   0xf   :  { %v2068_v32 = vunpack.c.0.s8 %v115_v23 }
  0x11   :  { %1807 = vmatmul.msk.f32.gmra.mxu0 %vm35_vm0, %v28_v5 }
  0x86   :  { %v59_v7 = vpop.f32.mrf.mxu0 }
  0x87   :  { %v60_v8 = vadd.f32 %v1871_v6, %v59_v7 }
  0x89   :  { %79 = vrot.lane.b32.xlu1 %v60_v8, %s1957_s2  ;;  %67 = vrot.lane.b32.xlu0 %v60_v8, %s1958_s15  ;;  %v88_v24 = vrot.slane %v60_v8, 4 }
  0x8e   :  { %v62_v9 = vpop.f32.mrf.mxu0 }
  0x8f   :  { %v2033_v10 = vadd.f32 %v1871_v6, %v62_v9 }
  0x91   :  { %75 = vrot.lane.b32.xlu2 %v2033_v10, %s1959_s16  ;;  %69 = vrot.lane.b32.xlu1 %v2033_v10, %s1958_s15 }
  0x92   :  { %73 = vrot.lane.b32.xlu0 %v60_v8, %s1959_s16 }
  0x99   :  { %81 = vrot.lane.b32.xlu2 %v2033_v10, %s1957_s2 }
  0x9a   :  { %306 = vrot.lane.b32.xlu0 %v60_v8, %s1960_s17 }
  0xeb   :  { %v2051_v21 = vpop.permute.xlu2 %75 }
  0xf3   :  { %v2074_v40 = vpop.permute.xlu2 %81 }
  0xfb   :  { %v2039_v11 = vpop.permute.xlu1 %79  ;;  %v68_v12 = vpop.permute.xlu0 %67 }
  0xfc   :  { %v98_v15 = vrot.slane %v2039_v11, 4  ;;  %v100_v16 = vrot.slane %v68_v12, 4  ;;  %318 = vrot.lane.b32.xlu0 %v2039_v11, %s1960_s17  ;;  %310 = vrot.lane.b32.xlu1 %v68_v12, %s1960_s17  ;;  %v1851_v39 = vpack.i.bf16 %v68_v12, %v60_v8 }
  0xfe   :  { %v99_v17 = vsel %vm86_vm1, %v98_v15, %v68_v12  ;;  %v101_v18 = vsel %vm86_vm1, %v2039_v11, %v100_v16 }
  0xff   :  { %v109_v20 = vperm.slane %v101_v18, %v2048_v19  ;;  %v105_v25 = vperm.slane %v99_v17, %v2048_v19 }
 0x101   :  { %v122_v30 = vrot.slane %v109_v20, 4  ;;  %v110_v34 = vrot.slane %v105_v25, 4 }
 0x103   :  { %v2078_v44 = vpop.permute.xlu1 %69 }
 0x104   :  { %v2054_v26 = vpop.permute.xlu0 %73  ;;  %316 = vrot.lane.b32.xlu0 %v2051_v21, %s1960_s17  ;;  %308 = vrot.lane.b32.xlu1 %v2033_v10, %s1960_s17 }
 0x105   :  { %v85_v27 = vrot.slane %v2054_v26, 4  ;;  %v89_v28 = vsel %vm86_vm1, %v2054_v26, %v88_v24  ;;  %314 = vrot.lane.b32.xlu2 %v2054_v26, %s1960_s17  ;;  %v1856_v29 = vpack.i.bf16 %v2039_v11, %v2054_v26 }
 0x106   :  { %v97_v31 = vperm.slane %v89_v28, %v2048_v19  ;;  %v142_v28 = vrot.slane %v2051_v21, 4 }
 0x107   :  { %v87_v33 = vsel %vm86_vm1, %v85_v27, %v60_v8 }
 0x108   :  { %v93_v35 = vperm.slane %v87_v33, %v2048_v19  ;;  %v123_v36 = vsel %vm86_vm1, %v122_v30, %v97_v31  ;;  %v124_v37 = vrot.slane %v97_v31, 4  ;;  %v154_v30 = vrot.slane %v2074_v40, 4 }
 0x109   :  { %v129_v43 = vperm.slane %v123_v36, %v2068_v32  ;;  %v156_v31 = vrot.slane %v2078_v44, 4  ;;  %v143_v33 = vsel %vm86_vm1, %v142_v28, %v2033_v10 }
 0x10a   :  { %v111_v38 = vsel %vm86_vm1, %v110_v34, %v93_v35  ;;  %v112_v41 = vrot.slane %v93_v35, 4  ;;  %v125_v42 = vsel %vm86_vm1, %v109_v20, %v124_v37  ;;  %v144_v34 = vrot.slane %v2033_v10, 4 }
 0x10b   :  { %v117_v45 = vperm.slane %v111_v38, %v2068_v32  ;;  %v133_v47 = vperm.slane %v125_v42, %v2068_v32  ;;  %v138_v49 = vrot.slane %v129_v43, 4  ;;  %v155_v36 = vsel %vm86_vm1, %v154_v30, %v2078_v44 }
 0x10c   :  { %1852 = vrot.lane.b32.xlu0 %v1851_v39, %s1963_s18  ;;  %320 = vrot.lane.b32.xlu1 %v2074_v40, %s1960_s17  ;;  %v113_v46 = vsel %vm86_vm1, %v105_v25, %v112_v41  ;;  %v145_v35 = vsel %vm86_vm1, %v2051_v21, %v144_v34  ;;  %v149_v37 = vperm.slane %v143_v33, %v2048_v19 }
 0x10d   :  { %312 = vrot.lane.b32.xlu2 %v2078_v44, %s1960_s17  ;;  %v121_v48 = vperm.slane %v113_v46, %v2068_v32  ;;  %v140_v50 = vrot.slane %v133_v47, 4  ;;  %v134_v51 = vrot.slane %v117_v45, 4  ;;  %v139_v59 = vsel %vm86_vm1, 0.0, %v138_v49 }
 0x10e   :  { %v157_v38 = vsel %vm86_vm1, %v2074_v40, %v156_v31  ;;  %v153_v39 = vperm.slane %v145_v35, %v2048_v19  ;;  %v161_v41 = vperm.slane %v155_v36, %v2048_v19 }
 0x10f   :  { %v136_v52 = vrot.slane %v121_v48, 4  ;;  %v141_v53 = vsel %vm86_vm1, 0.0, %v140_v50  ;;  %v209_v54 = vsel %vm86_vm1, %v140_v50, %v129_v43  ;;  %v135_v62 = vsel %vm86_vm1, 0.0, %v134_v51 }
 0x110   :  { %v214_v55 = vrot.slane %v141_v53, 4  ;;  %v213_v58 = vperm.slane %v209_v54, %v2048_v19  ;;  %v165_v42 = vperm.slane %v157_v38, %v2048_v19  ;;  %v168_v43 = vrot.slane %v149_v37, 4 }
 0x111   :  { %v137_v56 = vsel %vm86_vm1, 0.0, %v136_v52  ;;  %v198_v57 = vsel %vm86_vm1, %v136_v52, %v117_v45  ;;  %v180_v45 = vrot.slane %v153_v39, 4  ;;  %v166_v46 = vrot.slane %v161_v41, 4 }
 0x112   :  { %v202_v60 = vperm.slane %v198_v57, %v2048_v19  ;;  %v203_v61 = vrot.slane %v137_v56, 4  ;;  %v215_v63 = vsel %vm86_vm1, %v214_v55, %v139_v59  ;;  %v234_v0 = vrot.slane %v213_v58, 4  ;;  %v307_v55 = vpop.permute.xlu0 %306 }
 0x113   :  { %v219_v2 = vperm.slane %v215_v63, %v2048_v19  ;;  %v169_v47 = vsel %vm86_vm1, %v161_v41, %v168_v43  ;;  %v178_v48 = vrot.slane %v165_v42, 4  ;;  %v181_v49 = vsel %vm86_vm1, %v165_v42, %v180_v45 }
 0x114   :  { %v204_v1 = vsel %vm86_vm1, %v203_v61, %v135_v62  ;;  %v222_v3 = vrot.slane %v202_v60, 4  ;;  %v177_v50 = vperm.slane %v169_v47, %v2068_v32  ;;  %v167_v52 = vsel %vm86_vm1, %v166_v46, %v149_v37 }
 0x115   :  { %v208_v4 = vperm.slane %v204_v1, %v2048_v19  ;;  %v235_v5 = vsel %vm86_vm1, %v219_v2, %v234_v0  ;;  %v232_v6 = vrot.slane %v219_v2, 4  ;;  %v179_v53 = vsel %vm86_vm1, %v178_v48, %v153_v39 }
 0x116   :  { %v243_v8 = vperm.slane %v235_v5, %v2068_v32  ;;  %v189_v54 = vperm.slane %v181_v49, %v2068_v32  ;;  %v173_v57 = vperm.slane %v167_v52, %v2068_v32  ;;  %v185_v59 = vperm.slane %v179_v53, %v2068_v32 }
 0x117   :  { %v223_v7 = vsel %vm86_vm1, %v208_v4, %v222_v3  ;;  %v220_v9 = vrot.slane %v208_v4, 4  ;;  %v233_v13 = vsel %vm86_vm1, %v232_v6, %v213_v58  ;;  %v192_v58 = vrot.slane %v177_v50, 4 }
 0x118   :  { %v231_v12 = vperm.slane %v223_v7, %v2068_v32  ;;  %v248_v14 = vrot.slane %v243_v8, 4  ;;  %v239_v16 = vperm.slane %v233_v13, %v2068_v32  ;;  %v196_v61 = vrot.slane %v189_v54, 4 }
 0x119   :  { %v221_v15 = vsel %vm86_vm1, %v220_v9, %v202_v60  ;;  %v332_v60 = vrot.slane %v307_v55, 4  ;;  %v190_v0 = vrot.slane %v173_v57, 4  ;;  %v193_v1 = vsel %vm86_vm1, 0.0, %v192_v58 }
 0x11a   :  { %v250_v17 = vrot.slane %v231_v12, 4  ;;  %v227_v18 = vperm.slane %v221_v15, %v2068_v32  ;;  %v2110_v20 = vsel %vm86_vm1, %v248_v14, %v231_v12  ;;  %v244_v22 = vrot.slane %v239_v16, 4 }
 0x11b   :  { %v194_v2 = vrot.slane %v185_v59, 4  ;;  %v197_v3 = vsel %vm86_vm1, 0.0, %v196_v61  ;;  %v191_v13 = vsel %vm86_vm1, 0.0, %v190_v0  ;;  %v263_v14 = vsel %vm86_vm1, %v196_v61, %v185_v59 }
 0x11c   :  { %v2113_v23 = vsel %vm86_vm1, %v243_v8, %v250_v17  ;;  %v246_v24 = vrot.slane %v227_v18, 4  ;;  %v2116_v25 = vsel %vm86_vm1, %v244_v22, %v227_v18  ;;  %v257_v8 = vrot.slane %v193_v1, 4 }
 0x11d   :  { %v268_v15 = vrot.slane %v197_v3, 4  ;;  %v195_v18 = vsel %vm86_vm1, 0.0, %v194_v2  ;;  %v252_v31 = vsel %vm86_vm1, %v192_v58, %v173_v57  ;;  %v2161_v34 = vperm.slane %v263_v14, %v2048_v19 }
 0x11e   :  { %v2119_v27 = vsel %vm86_vm1, %v239_v16, %v246_v24  ;;  %v258_v33 = vsel %vm86_vm1, %v257_v8, %v191_v13  ;;  %v2171_v48 = vperm.slane %v252_v31, %v2048_v19 }
 0x11f   :  { %v269_v42 = vsel %vm86_vm1, %v268_v15, %v195_v18  ;;  %v2174_v49 = vperm.slane %v258_v33, %v2048_v19  ;;  %v288_v58 = vrot.slane %v2161_v34, 4 }
 0x120   :  { %v2179_v57 = vperm.slane %v269_v42, %v2048_v19 }
 0x122   :  { %v289_v33 = vsel %vm86_vm1, %v2179_v57, %v288_v58 }
 0x15f   :  { %v315_v51 = vpop.permute.xlu2 %314 }
 0x160   :  { %v330_v56 = vrot.slane %v315_v51, 4  ;;  %v333_v63 = vsel %vm86_vm1, %v315_v51, %v332_v60 }
 0x161   :  { %v341_v5 = vperm.slane %v333_v63, %v2048_v19 }
 0x162   :  { %v331_v62 = vsel %vm86_vm1, %v330_v56, %v307_v55 }
 0x163   :  { %v337_v4 = vperm.slane %v331_v62, %v2048_v19  ;;  %v368_v24 = vrot.slane %v341_v5, 4 }
 0x165   :  { %v356_v22 = vrot.slane %v337_v4, 4 }
 0x167   :  { %v313_v55 = vpop.permute.xlu2 %312 }
 0x16e   :  { %v311_v6 = vpop.permute.xlu1 %310  ;;  %v319_v7 = vpop.permute.xlu0 %318 }
 0x16f   :  { %v344_v9 = vrot.slane %v311_v6, 4  ;;  %v342_v12 = vrot.slane %v319_v7, 4 }
 0x171   :  { %v343_v16 = vsel %vm86_vm1, %v342_v12, %v311_v6  ;;  %v345_v17 = vsel %vm86_vm1, %v319_v7, %v344_v9 }
 0x172   :  { %v349_v28 = vperm.slane %v343_v16, %v2048_v19  ;;  %v353_v30 = vperm.slane %v345_v17, %v2048_v19 }
 0x174   :  { %v354_v35 = vrot.slane %v349_v28, 4  ;;  %v357_v36 = vsel %vm86_vm1, %v349_v28, %v356_v22  ;;  %v366_v37 = vrot.slane %v353_v30, 4  ;;  %v369_v38 = vsel %vm86_vm1, %v353_v30, %v368_v24 }
 0x175   :  { %v365_v39 = vperm.slane %v357_v36, %v2068_v32  ;;  %v377_v41 = vperm.slane %v369_v38, %v2068_v32  ;;  %v274_v22 = vrot.slane %v2174_v49, 4  ;;  %v276_v24 = vrot.slane %v2171_v48, 4 }
 0x176   :  { %v355_v43 = vsel %vm86_vm1, %v354_v35, %v337_v4  ;;  %v367_v45 = vsel %vm86_vm1, %v366_v37, %v341_v5  ;;  %v309_v46 = vpop.permute.xlu1 %308  ;;  %v317_v47 = vpop.permute.xlu0 %316  ;;  %v400_v4 = vrot.slane %v313_v55, 4 }
 0x177   :  { %v361_v50 = vperm.slane %v355_v43, %v2068_v32  ;;  %v373_v51 = vperm.slane %v367_v45, %v2068_v32  ;;  %v380_v52 = vrot.slane %v365_v39, 4  ;;  %v384_v53 = vrot.slane %v377_v41, 4 }
 0x178   :  { %v388_v54 = vrot.slane %v309_v46, 4  ;;  %v386_v56 = vrot.slane %v317_v47, 4 }
 0x179   :  { %v381_v59 = vsel %vm86_vm1, 0.0, %v380_v52  ;;  %v382_v60 = vrot.slane %v373_v51, 4  ;;  %v385_v61 = vsel %vm86_vm1, 0.0, %v384_v53  ;;  %v453_v62 = vsel %vm86_vm1, %v384_v53, %v373_v51 }
 0x17a   :  { %v447_v63 = vrot.slane %v381_v59, 4  ;;  %v457_v0 = vperm.slane %v453_v62, %v2048_v19  ;;  %v458_v1 = vrot.slane %v385_v61, 4  ;;  %v387_v2 = vsel %vm86_vm1, %v386_v56, %v309_v46 }
 0x17b   :  { %v383_v3 = vsel %vm86_vm1, 0.0, %v382_v60  ;;  %v389_v5 = vsel %vm86_vm1, %v317_v47, %v388_v54  ;;  %v378_v6 = vrot.slane %v361_v50, 4  ;;  %v442_v8 = vsel %vm86_vm1, %v380_v52, %v361_v50 }
 0x17c   :  { %v397_v7 = vperm.slane %v389_v5, %v2048_v19  ;;  %v459_v9 = vsel %vm86_vm1, %v458_v1, %v383_v3  ;;  %v478_v12 = vrot.slane %v457_v0, 4  ;;  %v393_v13 = vperm.slane %v387_v2, %v2048_v19 }
 0x17d   :  { %v379_v14 = vsel %vm86_vm1, 0.0, %v378_v6  ;;  %v446_v15 = vperm.slane %v442_v8, %v2048_v19  ;;  %v463_v16 = vperm.slane %v459_v9, %v2048_v19 }
 0x17e   :  { %v321_v17 = vpop.permute.xlu1 %320  ;;  %v448_v18 = vsel %vm86_vm1, %v447_v63, %v379_v14  ;;  %v424_v28 = vrot.slane %v397_v7, 4  ;;  %v412_v39 = vrot.slane %v393_v13, 4 }
 0x17f   :  { %v398_v30 = vrot.slane %v321_v17, 4  ;;  %v401_v31 = vsel %vm86_vm1, %v321_v17, %v400_v4  ;;  %v452_v36 = vperm.slane %v448_v18, %v2048_v19  ;;  %v466_v37 = vrot.slane %v446_v15, 4 }
 0x180   :  { %v409_v35 = vperm.slane %v401_v31, %v2048_v19  ;;  %v479_v38 = vsel %vm86_vm1, %v463_v16, %v478_v12  ;;  %v476_v58 = vrot.slane %v463_v16, 4 }
 0x181   :  { %v399_v41 = vsel %vm86_vm1, %v398_v30, %v313_v55  ;;  %v487_v42 = vperm.slane %v479_v38, %v2068_v32  ;;  %v467_v47 = vsel %vm86_vm1, %v452_v36, %v466_v37  ;;  %v464_v53 = vrot.slane %v452_v36, 4 }
 0x182   :  { %v405_v43 = vperm.slane %v399_v41, %v2048_v19  ;;  %v422_v45 = vrot.slane %v409_v35, 4  ;;  %v425_v46 = vsel %vm86_vm1, %v409_v35, %v424_v28  ;;  %v475_v51 = vperm.slane %v467_v47, %v2068_v32 }
 0x183   :  { %v433_v50 = vperm.slane %v425_v46, %v2068_v32  ;;  %v492_v52 = vrot.slane %v487_v42, 4  ;;  %v465_v2 = vsel %vm86_vm1, %v464_v53, %v446_v15  ;;  %v477_v3 = vsel %vm86_vm1, %v476_v58, %v457_v0 }
 0x184   :  { %v410_v54 = vrot.slane %v405_v43, 4  ;;  %v413_v56 = vsel %vm86_vm1, %v405_v43, %v412_v39  ;;  %v423_v55 = vsel %vm86_vm1, %v422_v45, %v397_v7  ;;  %v494_v1 = vrot.slane %v475_v51, 4 }
 0x185   :  { %v421_v59 = vperm.slane %v413_v56, %v2068_v32  ;;  %v429_v60 = vperm.slane %v423_v55, %v2068_v32  ;;  %v440_v61 = vrot.slane %v433_v50, 4  ;;  %v493_v62 = vsel %vm86_vm1, %v492_v52, %v475_v51 }
 0x186   :  { %v411_v63 = vsel %vm86_vm1, %v410_v54, %v393_v13  ;;  %1812 = vmatpush.xpose.msk.msra.mxu3 %vm826_vm2, %v493_v62  ;;  %v495_v12 = vsel %vm86_vm1, %v487_v42, %v494_v1  ;;  %v471_v13 = vperm.slane %v465_v2, %v2068_v32  ;;  %v483_v18 = vperm.slane %v477_v3, %v2068_v32 }
 0x187   :  { %v417_v4 = vperm.slane %v411_v63, %v2068_v32  ;;  %v436_v5 = vrot.slane %v421_v59, 4  ;;  %v438_v6 = vrot.slane %v429_v60, 4  ;;  %v441_v7 = vsel %vm86_vm1, 0.0, %v440_v61  ;;  %1814 = vmatpush.xpose.msk.msra.mxu1 %vm826_vm2, %v495_v12 }
 0x188   :  { %v507_v8 = vsel %vm86_vm1, %v440_v61, %v429_v60  ;;  %v512_v9 = vrot.slane %v441_v7, 4  ;;  %v490_v28 = vrot.slane %v471_v13, 4  ;;  %v488_v38 = vrot.slane %v483_v18, 4 }
 0x189   :  { %v434_v14 = vrot.slane %v417_v4, 4  ;;  %v437_v16 = vsel %vm86_vm1, 0.0, %v436_v5  ;;  %v439_v15 = vsel %vm86_vm1, 0.0, %v438_v6  ;;  %v511_v0 = vperm.slane %v507_v8, %v2048_v19  ;;  %1813 = vmatmul.msk.f32.vlgmr.msra.gmra.mxu3 %vm826_vm2, %v2110_v20 }
 0x18a   :  { %v501_v17 = vrot.slane %v437_v16, 4  ;;  %v496_v30 = vsel %vm86_vm1, %v436_v5, %v417_v4  ;;  %v513_v36 = vsel %vm86_vm1, %v512_v9, %v439_v15  ;;  %1815 = vmatmul.msk.f32.vlgmr.msra.gmra.mxu1 %vm826_vm2, %v2113_v23  ;;  %v286_v41 = vrot.slane %v2179_v57, 4 }
 0x18b   :  { %v435_v31 = vsel %vm86_vm1, 0.0, %v434_v14  ;;  %v500_v35 = vperm.slane %v496_v30, %v2048_v19  ;;  %v532_v37 = vrot.slane %v511_v0, 4  ;;  %v517_v20 = vperm.slane %v513_v36, %v2048_v19  ;;  %v1874_v30 = vld [vmem:[%s2662_s1] ss:$0 sm:$0xff] }
 0x18c   :  { %v502_v39 = vsel %vm86_vm1, %v501_v17, %v435_v31  ;;  %v491_v42 = vsel %vm86_vm1, %v483_v18, %v490_v28  ;;  %v297_v46 = vperm.slane %v289_v33, %v2068_v32  ;;  %v489_v47 = vsel %vm86_vm1, %v488_v38, %v471_v13  ;;  %v1872_v13 = vld [vmem:[%s2662_s1 + $0x3] ss:$0 sm:$0xff]  ;;  %v1875_v28 = vld [vmem:[%s2662_s1 + $0x6] ss:$0 sm:$0xff] }
 0x18d   :  { %v506_v43 = vperm.slane %v502_v39, %v2048_v19  ;;  %v520_v45 = vrot.slane %v500_v35, 4  ;;  %v530_v50 = vrot.slane %v517_v20, 4  ;;  %v533_v51 = vsel %vm86_vm1, %v517_v20, %v532_v37  ;;  %1808 = vmatpush.xpose.msk.msra.mxu2 %vm826_vm2, %v489_v47  ;;  %v1876_v20 = vld [vmem:[%s2662_s1 + $0x1] ss:$0 sm:$0xff] }
 0x18e   :  { %v275_v23 = vsel %vm86_vm1, %v274_v22, %v2171_v48  ;;  %v541_v53 = vperm.slane %v533_v51, %v2068_v32  ;;  %v277_v56 = vsel %vm86_vm1, %v2174_v49, %v276_v24  ;;  %v302_v61 = vrot.slane %v297_v46, 4 }
 0x18f   :  { %v518_v57 = vrot.slane %v506_v43, 4  ;;  %v521_v52 = vsel %vm86_vm1, %v506_v43, %v520_v45  ;;  %v531_v54 = vsel %vm86_vm1, %v530_v50, %v511_v0  ;;  %v281_v59 = vperm.slane %v275_v23, %v2068_v32  ;;  %v1878_v43 = vld [vmem:[%s2662_s1 + $0x5] ss:$0 sm:$0xff]  ;;  %v1877_v23 = vld [vmem:[%s2662_s1 + $0x4] ss:$0 sm:$0xff] }
 0x190   :  { %v529_v33 = vperm.slane %v521_v52, %v2068_v32  ;;  %v546_v55 = vrot.slane %v541_v53, 4  ;;  %v537_v58 = vperm.slane %v531_v54, %v2068_v32  ;;  %1809 = vmatmul.msk.f32.vlgmr.msra.gmra.mxu2 %vm826_vm2, %v2116_v25  ;;  %v287_v62 = vsel %vm86_vm1, %v286_v41, %v2161_v34 }
 0x191   :  { %1810 = vmatpush.xpose.msk.msrb.mxu2 %vm826_vm2, %v491_v42  ;;  %v519_v22 = vsel %vm86_vm1, %v518_v57, %v500_v35  ;;  %v285_v24 = vperm.slane %v277_v56, %v2068_v32  ;;  %v293_v3 = vperm.slane %v287_v62, %v2068_v32  ;;  %v300_v25 = vrot.slane %v281_v59, 4  ;;  %v1879_v57 = vld [vmem:[%s2662_s1 + $0x7] ss:$0 sm:$0xff] }
 0x192   :  { %v525_v60 = vperm.slane %v519_v22, %v2068_v32  ;;  %v547_v48 = vsel %vm86_vm1, %v546_v55, %v529_v33  ;;  %v542_v63 = vrot.slane %v537_v58, 4  ;;  %v548_v49 = vrot.slane %v529_v33, 4 }
 0x193   :  { %1820 = vmatpush.xpose.msk.msrb.mxu1 %vm826_vm2, %v547_v48  ;;  %v303_v4 = vsel %vm86_vm1, %v302_v61, %v285_v24  ;;  %v301_v6 = vsel %vm86_vm1, %v293_v3, %v300_v25  ;;  %v298_v7 = vrot.slane %v293_v3, 4  ;;  %v304_v9 = vrot.slane %v285_v24, 4 }
 0x194   :  { %v544_v1 = vrot.slane %v525_v60, 4  ;;  %v543_v2 = vsel %vm86_vm1, %v542_v63, %v525_v60  ;;  %v549_v5 = vsel %vm86_vm1, %v541_v53, %v548_v49  ;;  %v1866_v55 = vpack.i.bf16 %v2074_v40, %v2051_v21 }
 0x195   :  { %1816 = vmatpush.xpose.msk.msra.mxu2 %vm826_vm2, %v543_v2  ;;  %v299_v8 = vsel %vm86_vm1, %v298_v7, %v281_v59  ;;  %v305_v12 = vsel %vm86_vm1, %v297_v46, %v304_v9  ;;  %v1861_v22 = vpack.i.bf16 %v2078_v44, %v2033_v10 }
 0x196   :  { %v545_v34 = vsel %vm86_vm1, %v537_v58, %v544_v1  ;;  %1821 = vmatmul.msk.f32.vlgmr.msrb.gmra.mxu1 %vm826_vm2, %v303_v4  ;;  %v2334_v58 = vpop.permute.xlu0 %1852 }
 0x197   :  { %1818 = vmatpush.xpose.msk.msrb.mxu3 %vm826_vm2, %v545_v34  ;;  %v1854_v9 = vunpack.i.l.bf16 %v2334_v58 }
 0x198   :  { %1811 = vmatmul.msk.f32.vlgmr.msrb.gmra.mxu2 %vm826_vm2, %v2119_v27  ;;  %v1873_v27 = vld [vmem:[%s2662_s1 + $0x2] ss:$0 sm:$0xff]  ;;  %s1964_s1 = smov 24  }
 0x199   :  { %1822 = vmatpush.xpose.msk.msrb.mxu2 %vm826_vm2, %v549_v5 }
 0x19a   :  { %1819 = vmatmul.msk.f32.vlgmr.msrb.gmra.mxu3 %vm826_vm2, %v301_v6 }
 0x1a0   :  { %1817 = vmatmul.msk.f32.vlgmr.msra.gmra.mxu2 %vm826_vm2, %v299_v8  ;;  %v1855_v8 = vunpack.i.h.bf16 %v2334_v58 }
 0x1a8   :  { %1823 = vmatmul.msk.f32.vlgmr.msrb.gmra.mxu2 %vm826_vm2, %v305_v12 }
 0x207   :  { %v928_v14 = vpop.f32.mrf.mxu1 }
 0x208   :  { %v929_v16 = vadd.f32 %v1872_v13, %v928_v14 }
 0x20a   :  { %v1044_v15 = vsel %vm826_vm2, %v929_v16, -inf }
 0x20b   :  { %1045 = vmax.xlane.f32.xlu0 %v1044_v15 }
 0x20c   :  { %v902_v0 = vpop.f32.mrf.mxu3 }
 0x20d   :  { %v903_v17 = vadd.f32 %v1873_v27, %v902_v0  ;;  %v588_v27 = vrot.slane %v1855_v8, 4 }
 0x20f   :  { %v1041_v18 = vsel %vm826_vm2, %v903_v17, -inf }
 0x210   :  { %1042 = vmax.xlane.f32.xlu1 %v1041_v18 }
 0x213   :  { %v1006_v31 = vpop.f32.mrf.mxu1  ;;  %v850_v35 = vpop.f32.mrf.mxu2 }
 0x214   :  { %v1007_v36 = vadd.f32 %v1875_v28, %v1006_v31  ;;  %v851_v37 = vadd.f32 %v1874_v30, %v850_v35 }
 0x216   :  { %v1053_v38 = vsel %vm826_vm2, %v1007_v36, -inf  ;;  %v1035_v39 = vsel %vm826_vm2, %v851_v37, -inf }
 0x217   :  { %1036 = vmax.xlane.f32.xlu2 %v1035_v39 }
 0x218   :  { %1054 = vmax.xlane.f32.xlu1 %v1053_v38 }
 0x21b   :  { %v876_v41 = vpop.f32.mrf.mxu2 }
 0x21c   :  { %v877_v42 = vadd.f32 %v1876_v20, %v876_v41 }
 0x21d   :  { %v980_v45 = vpop.f32.mrf.mxu3 }
 0x21e   :  { %v1038_v46 = vsel %vm826_vm2, %v877_v42, -inf  ;;  %v2312_v47 = vadd.f32 %v1878_v43, %v980_v45 }
 0x21f   :  { %1039 = vmax.xlane.f32.xlu2 %v1038_v46 }
 0x220   :  { %v1050_v51 = vsel %vm826_vm2, %v2312_v47, -inf }
 0x223   :  { %v954_v50 = vpop.f32.mrf.mxu2 }
 0x224   :  { %v955_v52 = vadd.f32 %v1877_v23, %v954_v50 }
 0x226   :  { %v1047_v56 = vsel %vm826_vm2, %v955_v52, -inf }
 0x227   :  { %1051 = vmax.xlane.f32.xlu2 %v1050_v51 }
 0x22b   :  { %v1032_v53 = vpop.f32.mrf.mxu2 }
 0x22c   :  { %v1033_v33 = vadd.f32 %v1879_v57, %v1032_v53 }
 0x22e   :  { %v1056_v54 = vsel %vm826_vm2, %v1033_v33, -inf }
 0x22f   :  { %1057 = vmax.xlane.f32.xlu0 %v1056_v54  ;;  %1048 = vmax.xlane.f32.xlu2 %v1047_v56 }
 0x231   :  { %1857 = vrot.lane.b32.xlu1 %v1856_v29, %s1963_s18 }
 0x243   :  { %1867 = vrot.lane.b32.xlu0 %v1866_v55, %s1963_s18 }
 0x247   :  { %1862 = vrot.lane.b32.xlu2 %v1861_v22, %s1963_s18 }
 0x27e   :  { %v1046_v59 = vpop.xlane.xlu0 %1045 }
 0x27f   :  { %v1062_v60 = vsub.f32 %v929_v16, %v1046_v59 }
 0x281   :  { %v1073_v61 = vmul.f32 1.442695, %v1062_v60 }
 0x283   :  { %v1043_v62 = vpop.xlane.xlu1 %1042  ;;  %1887 = vpow2.f32 %v1073_v61 }
 0x284   :  { %v1061_v48 = vsub.f32 %v903_v17, %v1043_v62  ;;  %v576_v17 = vrot.slane %v1854_v9, 4 }
 0x286   :  { %v1071_v11 = vmul.f32 1.442695, %v1061_v48 }
 0x288   :  { %1889 = vpow2.f32 %v1071_v11 }
 0x289   :  { %v2336_v26 = vpop.eup %1887 }
 0x28a   :  { %v1037_v21 = vpop.xlane.xlu2 %1036  ;;  %v1092_v29 = vsel %vm826_vm2, %v2336_v26, 0.0 }
 0x28b   :  { %v1059_v40 = vsub.f32 %v851_v37, %v1037_v21  ;;  %1093 = vadd.xlane.f32.xlu0 %v1092_v29  ;;  %v1055_v49 = vpop.xlane.xlu1 %1054 }
 0x28c   :  { %v1065_v2 = vsub.f32 %v1007_v36, %v1055_v49 }
 0x28d   :  { %v1067_v44 = vmul.f32 1.442695, %v1059_v40 }
 0x28e   :  { %v2340_v10 = vpop.eup %1889  ;;  %v1079_v34 = vmul.f32 1.442695, %v1065_v2 }
 0x28f   :  { %v1089_v63 = vsel %vm826_vm2, %v2340_v10, 0.0  ;;  %1891 = vpow2.f32 %v1067_v44 }
 0x290   :  { %1090 = vadd.xlane.f32.xlu2 %v1089_v63 }
 0x292   :  { %v1040_v24 = vpop.xlane.xlu2 %1039 }
 0x293   :  { %v1060_v1 = vsub.f32 %v877_v42, %v1040_v24 }
 0x295   :  { %v2344_v3 = vpop.eup %1891  ;;  %v1069_v25 = vmul.f32 1.442695, %v1060_v1 }
 0x296   :  { %v1083_v4 = vsel %vm826_vm2, %v2344_v3, 0.0 }
 0x297   :  { %1893 = vpow2.f32 %v1069_v25  ;;  %1084 = vadd.xlane.f32.xlu1 %v1083_v4 }
 0x298   :  { %1895 = vpow2.f32 %v1079_v34 }
 0x29a   :  { %v1052_v5 = vpop.xlane.xlu2 %1051 }
 0x29b   :  { %v1064_v18 = vsub.f32 %v2312_v47, %v1052_v5 }
 0x29d   :  { %v2348_v6 = vpop.eup %1893  ;;  %v1077_v43 = vmul.f32 1.442695, %v1064_v18 }
 0x29e   :  { %v1086_v7 = vsel %vm826_vm2, %v2348_v6, 0.0  ;;  %v2354_v12 = vpop.eup %1895 }
 0x29f   :  { %1087 = vadd.xlane.f32.xlu1 %v1086_v7  ;;  %v1101_v36 = vsel %vm826_vm2, %v2354_v12, 0.0 }
 0x2a2   :  { %v1058_v13 = vpop.xlane.xlu0 %1057  ;;  %v1049_v14 = vpop.xlane.xlu2 %1048 }
 0x2a3   :  { %v1066_v16 = vsub.f32 %v1033_v33, %v1058_v13  ;;  %v1063_v15 = vsub.f32 %v955_v52, %v1049_v14  ;;  %v1858_v0 = vpop.permute.xlu1 %1857 }
 0x2a4   :  { %v1860_v28 = vunpack.i.h.bf16 %v1858_v0  ;;  %v1859_v30 = vunpack.i.l.bf16 %v1858_v0 }
 0x2a5   :  { %v1081_v31 = vmul.f32 1.442695, %v1066_v16  ;;  %v1075_v35 = vmul.f32 1.442695, %v1063_v15 }
 0x2a6   :  { %v586_v37 = vrot.slane %v1860_v28, 4  ;;  %v589_v38 = vsel %vm86_vm1, %v1860_v28, %v588_v27  ;;  %v574_v39 = vrot.slane %v1859_v30, 4  ;;  %v577_v20 = vsel %vm86_vm1, %v1859_v30, %v576_v17 }
 0x2a7   :  { %1897 = vpow2.f32 %v1081_v31  ;;  %1102 = vadd.xlane.f32.xlu1 %v1101_v36  ;;  %v597_v41 = vperm.slane %v589_v38, %v2048_v19  ;;  %v585_v42 = vperm.slane %v577_v20, %v2048_v19 }
 0x2a8   :  { %1899 = vpow2.f32 %v1075_v35  ;;  %v587_v45 = vsel %vm86_vm1, %v586_v37, %v1855_v8  ;;  %v575_v46 = vsel %vm86_vm1, %v574_v39, %v1854_v9 }
 0x2a9   :  { %v593_v47 = vperm.slane %v587_v45, %v2048_v19  ;;  %v610_v50 = vrot.slane %v597_v41, 4  ;;  %v581_v51 = vperm.slane %v575_v46, %v2048_v19  ;;  %v612_v23 = vrot.slane %v585_v42, 4 }
 0x2aa   :  { %1901 = vpow2.f32 %v1077_v43  ;;  %v1863_v11 = vpop.permute.xlu2 %1862 }
 0x2ab   :  { %v598_v57 = vrot.slane %v593_v47, 4  ;;  %v600_v52 = vrot.slane %v581_v51, 4  ;;  %v611_v53 = vsel %vm86_vm1, %v610_v50, %v585_v42  ;;  %v613_v33 = vsel %vm86_vm1, %v597_v41, %v612_v23 }
 0x2ac   :  { %v617_v54 = vperm.slane %v611_v53, %v2068_v32  ;;  %v621_v56 = vperm.slane %v613_v33, %v2068_v32  ;;  %v1865_v1 = vunpack.i.h.bf16 %v1863_v11  ;;  %v1864_v2 = vunpack.i.l.bf16 %v1863_v11 }
 0x2ad   :  { %v2371_v55 = vpop.eup %1897  ;;  %v599_v22 = vsel %vm86_vm1, %v598_v57, %v581_v51  ;;  %v601_v58 = vsel %vm86_vm1, %v593_v47, %v600_v52 }
 0x2ae   :  { %v2375_v59 = vpop.eup %1899  ;;  %v605_v60 = vperm.slane %v599_v22, %v2068_v32  ;;  %v609_v61 = vperm.slane %v601_v58, %v2068_v32  ;;  %v626_v62 = vrot.slane %v617_v54, 4  ;;  %v628_v48 = vrot.slane %v621_v56, 4 }
 0x2af   :  { %v1104_v21 = vsel %vm826_vm2, %v2371_v55, 0.0  ;;  %v1095_v29 = vsel %vm826_vm2, %v2375_v59, 0.0  ;;  %v644_v15 = vrot.slane %v1865_v1, 4  ;;  %v632_v0 = vrot.slane %v1864_v2, 4 }
 0x2b0   :  { %v622_v40 = vrot.slane %v605_v60, 4  ;;  %v624_v44 = vrot.slane %v609_v61, 4  ;;  %v629_v63 = vsel %vm86_vm1, 0.0, %v628_v48  ;;  %1105 = vadd.xlane.f32.xlu2 %v1104_v21  ;;  %1096 = vadd.xlane.f32.xlu0 %v1095_v29  ;;  %v697_v49 = vsel %vm86_vm1, %v628_v48, %v617_v54  ;;  %v2389_v7 = vpop.eup %1901 }
 0x2b1   :  { %v702_v24 = vrot.slane %v629_v63, 4  ;;  %v627_v4 = vsel %vm86_vm1, 0.0, %v626_v62  ;;  %v701_v5 = vperm.slane %v697_v49, %v2048_v19  ;;  %v1098_v37 = vsel %vm826_vm2, %v2389_v7, 0.0 }
 0x2b2   :  { %v625_v25 = vsel %vm86_vm1, 0.0, %v624_v44  ;;  %v686_v34 = vsel %vm86_vm1, %v624_v44, %v605_v60  ;;  %v623_v14 = vsel %vm86_vm1, 0.0, %v622_v40 }
 0x2b3   :  { %v691_v8 = vrot.slane %v625_v25, 4  ;;  %v690_v9 = vperm.slane %v686_v34, %v2048_v19  ;;  %v703_v13 = vsel %vm86_vm1, %v702_v24, %v627_v4  ;;  %v722_v16 = vrot.slane %v701_v5, 4 }
 0x2b4   :  { %v707_v27 = vperm.slane %v703_v13, %v2048_v19 }
 0x2b5   :  { %v1868_v17 = vpop.permute.xlu0 %1867  ;;  %v692_v18 = vsel %vm86_vm1, %v691_v8, %v623_v14  ;;  %v710_v28 = vrot.slane %v690_v9, 4 }
 0x2b6   :  { %v1870_v30 = vunpack.i.h.bf16 %v1868_v17  ;;  %v1869_v31 = vunpack.i.l.bf16 %v1868_v17  ;;  %v696_v35 = vperm.slane %v692_v18, %v2048_v19  ;;  %v723_v36 = vsel %vm86_vm1, %v707_v27, %v722_v16 }
 0x2b7   :  { %v731_v38 = vperm.slane %v723_v36, %v2068_v32  ;;  %v720_v39 = vrot.slane %v707_v27, 4 }
 0x2b8   :  { %v642_v20 = vrot.slane %v1870_v30, 4  ;;  %v630_v41 = vrot.slane %v1869_v31, 4  ;;  %v633_v42 = vsel %vm86_vm1, %v1869_v31, %v632_v0  ;;  %v645_v43 = vsel %vm86_vm1, %v1870_v30, %v644_v15  ;;  %1099 = vadd.xlane.f32.xlu0 %v1098_v37 }
 0x2b9   :  { %v641_v45 = vperm.slane %v633_v42, %v2048_v19  ;;  %v653_v46 = vperm.slane %v645_v43, %v2048_v19  ;;  %v711_v47 = vsel %vm86_vm1, %v696_v35, %v710_v28  ;;  %v736_v50 = vrot.slane %v731_v38, 4 }
 0x2ba   :  { %v631_v51 = vsel %vm86_vm1, %v630_v41, %v1864_v2  ;;  %v643_v23 = vsel %vm86_vm1, %v642_v20, %v1865_v1  ;;  %v719_v57 = vperm.slane %v711_v47, %v2068_v32  ;;  %v708_v52 = vrot.slane %v696_v35, 4 }
 0x2bb   :  { %v637_v53 = vperm.slane %v631_v51, %v2048_v19  ;;  %v649_v33 = vperm.slane %v643_v23, %v2048_v19  ;;  %v666_v54 = vrot.slane %v653_v46, 4  ;;  %v668_v56 = vrot.slane %v641_v45, 4 }
 0x2bc   :  { %v737_v22 = vsel %vm86_vm1, %v736_v50, %v719_v57  ;;  %v709_v58 = vsel %vm86_vm1, %v708_v52, %v690_v9  ;;  %v721_v60 = vsel %vm86_vm1, %v720_v39, %v701_v5  ;;  %v738_v61 = vrot.slane %v719_v57, 4 }
 0x2bd   :  { %v654_v62 = vrot.slane %v649_v33, 4  ;;  %v656_v48 = vrot.slane %v637_v53, 4  ;;  %v667_v11 = vsel %vm86_vm1, %v666_v54, %v641_v45  ;;  %v669_v21 = vsel %vm86_vm1, %v653_v46, %v668_v56  ;;  %1187 = vmatpush.msra.mxu1 %v737_v22 }
 0x2be   :  { %v673_v29 = vperm.slane %v667_v11, %v2068_v32  ;;  %v677_v40 = vperm.slane %v669_v21, %v2068_v32  ;;  %v715_v44 = vperm.slane %v709_v58, %v2068_v32  ;;  %v727_v63 = vperm.slane %v721_v60, %v2068_v32 }
 0x2bf   :  { %v655_v49 = vsel %vm86_vm1, %v654_v62, %v637_v53  ;;  %v657_v24 = vsel %vm86_vm1, %v649_v33, %v656_v48  ;;  %v739_v1 = vsel %vm86_vm1, %v731_v38, %v738_v61 }
 0x2c0   :  { %v661_v2 = vperm.slane %v655_v49, %v2068_v32  ;;  %v665_v25 = vperm.slane %v657_v24, %v2068_v32  ;;  %v682_v4 = vrot.slane %v673_v29, 4  ;;  %v684_v34 = vrot.slane %v677_v40, 4  ;;  %1210 = vmatpush.msra.mxu2 %v739_v1 }
 0x2c1   :  { %v732_v5 = vrot.slane %v727_v63, 4  ;;  %v734_v8 = vrot.slane %v715_v44, 4 }
 0x2c2   :  { %v678_v9 = vrot.slane %v661_v2, 4  ;;  %v680_v13 = vrot.slane %v665_v25, 4  ;;  %v685_v14 = vsel %vm86_vm1, 0.0, %v684_v34  ;;  %v751_v27 = vsel %vm86_vm1, %v684_v34, %v673_v29 }
 0x2c3   :  { %v756_v16 = vrot.slane %v685_v14, 4  ;;  %v733_v15 = vsel %vm86_vm1, %v732_v5, %v715_v44  ;;  %v735_v0 = vsel %vm86_vm1, %v727_v63, %v734_v8  ;;  %v683_v18 = vsel %vm86_vm1, 0.0, %v682_v4 }
 0x2c4   :  { %v681_v17 = vsel %vm86_vm1, 0.0, %v680_v13  ;;  %1141 = vmatpush.msra.mxu3 %v733_v15  ;;  %1164 = vmatpush.msrb.mxu0 %v735_v0  ;;  %v740_v28 = vsel %vm86_vm1, %v680_v13, %v661_v2  ;;  %v755_v30 = vperm.slane %v751_v27, %v2048_v19  ;;  %v679_v37 = vsel %vm86_vm1, 0.0, %v678_v9 }
 0x2c5   :  { %v745_v31 = vrot.slane %v681_v17, 4  ;;  %v744_v35 = vperm.slane %v740_v28, %v2048_v19  ;;  %v757_v36 = vsel %vm86_vm1, %v756_v16, %v683_v18 }
 0x2c6   :  { %v761_v38 = vperm.slane %v757_v36, %v2048_v19  ;;  %v776_v39 = vrot.slane %v755_v30, 4 }
 0x2c7   :  { %v746_v20 = vsel %vm86_vm1, %v745_v31, %v679_v37  ;;  %v764_v41 = vrot.slane %v744_v35, 4 }
 0x2c8   :  { %v750_v42 = vperm.slane %v746_v20, %v2048_v19  ;;  %v777_v43 = vsel %vm86_vm1, %v761_v38, %v776_v39  ;;  %v774_v45 = vrot.slane %v761_v38, 4 }
 0x2c9   :  { %v785_v46 = vperm.slane %v777_v43, %v2068_v32 }
 0x2ca   :  { %v765_v47 = vsel %vm86_vm1, %v750_v42, %v764_v41  ;;  %v762_v50 = vrot.slane %v750_v42, 4  ;;  %v775_v51 = vsel %vm86_vm1, %v774_v45, %v755_v30 }
 0x2cb   :  { %v773_v23 = vperm.slane %v765_v47, %v2068_v32  ;;  %v790_v57 = vrot.slane %v785_v46, 4  ;;  %v781_v52 = vperm.slane %v775_v51, %v2068_v32 }
 0x2cc   :  { %v763_v53 = vsel %vm86_vm1, %v762_v50, %v744_v35 }
 0x2cd   :  { %v791_v33 = vsel %vm86_vm1, %v790_v57, %v773_v23  ;;  %v769_v54 = vperm.slane %v763_v53, %v2068_v32  ;;  %v786_v56 = vrot.slane %v781_v52, 4  ;;  %v792_v22 = vrot.slane %v773_v23, 4 }
 0x2ce   :  { %1279 = vmatpush.msrb.mxu1 %v791_v33 }
 0x2cf   :  { %v787_v58 = vsel %vm86_vm1, %v786_v56, %v769_v54  ;;  %v793_v60 = vsel %vm86_vm1, %v785_v46, %v792_v22  ;;  %v788_v61 = vrot.slane %v769_v54, 4 }
 0x2d0   :  { %1233 = vmatpush.msrb.mxu3 %v787_v58  ;;  %1302 = vmatpush.msrb.mxu2 %v793_v60 }
 0x2d1   :  { %v789_v62 = vsel %vm86_vm1, %v781_v52, %v788_v61 }
 0x2d2   :  { %1256 = vmatpush.msra.mxu0 %v789_v62 }
 0x2fe   :  { %v1094_v48 = vpop.xlane.xlu0 %1093 }
 0x2ff   :  { %1903 = vrcp.f32 %v1094_v48 }
 0x303   :  { %v1091_v11 = vpop.xlane.xlu2 %1090 }
 0x304   :  { %1905 = vrcp.f32 %v1091_v11 }
 0x305   :  { %v1904_v21 = vpop.eup %1903 }
 0x306   :  { %v1118_v29 = vmul.f32 %v1904_v21, %v2336_v26 }
 0x308   :  { %1827 = vmatmul.msk.f32.vlgmr.msra.gmra.mxu2 %vm826_vm2, %v1118_v29 }
 0x30a   :  { %v1906_v40 = vpop.eup %1905  ;;  %v1085_v63 = vpop.xlane.xlu1 %1084 }
 0x30b   :  { %v1117_v44 = vmul.f32 %v1906_v40, %v2340_v10  ;;  %1907 = vrcp.f32 %v1085_v63 }
 0x30d   :  { %1826 = vmatmul.msk.f32.vlgmr.msra.gmra.mxu1 %vm826_vm2, %v1117_v44 }
 0x311   :  { %v1908_v49 = vpop.eup %1907 }
 0x312   :  { %v1115_v24 = vmul.f32 %v1908_v49, %v2344_v3  ;;  %v1088_v1 = vpop.xlane.xlu1 %1087 }
 0x313   :  { %1909 = vrcp.f32 %v1088_v1 }
 0x314   :  { %1824 = vmatmul.msk.f32.vlgmr.msra.gmra.mxu3 %vm826_vm2, %v1115_v24 }
 0x319   :  { %v1910_v2 = vpop.eup %1909 }
 0x31a   :  { %v1103_v25 = vpop.xlane.xlu1 %1102  ;;  %v1116_v26 = vmul.f32 %v1910_v2, %v2348_v6 }
 0x31b   :  { %1911 = vrcp.f32 %v1103_v25 }
 0x31c   :  { %1825 = vmatmul.msk.f32.vlgmr.msrb.gmra.mxu0 %vm826_vm2, %v1116_v26 }
 0x321   :  { %v1912_v4 = vpop.eup %1911 }
 0x322   :  { %v1121_v10 = vmul.f32 %v1912_v4, %v2354_v12 }
 0x323   :  { %v1097_v34 = vpop.xlane.xlu0 %1096  ;;  %v1106_v5 = vpop.xlane.xlu2 %1105 }
 0x324   :  { %1913 = vrcp.f32 %v1097_v34  ;;  %1830 = vmatmul.msk.f32.vlgmr.msrb.gmra.mxu1 %vm826_vm2, %v1121_v10 }
 0x325   :  { %1915 = vrcp.f32 %v1106_v5 }
 0x32a   :  { %v1914_v3 = vpop.eup %1913 }
 0x32b   :  { %v1916_v8 = vpop.eup %1915  ;;  %v1119_v9 = vmul.f32 %v1914_v3, %v2375_v59  ;;  %v1100_v13 = vpop.xlane.xlu0 %1099 }
 0x32c   :  { %v1122_v14 = vmul.f32 %v1916_v8, %v2371_v55  ;;  %1917 = vrcp.f32 %v1100_v13 }
 0x32d   :  { %1828 = vmatmul.msk.f32.vlgmr.msrb.gmra.mxu3 %vm826_vm2, %v1119_v9 }
 0x32e   :  { %1831 = vmatmul.msk.f32.vlgmr.msrb.gmra.mxu2 %vm826_vm2, %v1122_v14 }
 0x332   :  { %v1918_v6 = vpop.eup %1917 }
 0x333   :  { %v1120_v12 = vmul.f32 %v1918_v6, %v2389_v7 }
 0x335   :  { %1829 = vmatmul.msk.f32.vlgmr.msra.gmra.mxu0 %vm826_vm2, %v1120_v12 }
 0x38a   :  { %v1189_v27 = vpop.f32.mrf.mxu1 }
 0x38b   :  { %v1212_v16 = vpop.f32.mrf.mxu2  ;;  %v1307_v15 = vrot.slane %v1189_v27, 4 }
 0x38c   :  { %v1319_v17 = vrot.slane %v1212_v16, 4 }
 0x397   :  { %v1143_v0 = vpop.f32.mrf.mxu3 }
 0x398   :  { %v1308_v59 = vsel %vm86_vm1, %v1307_v15, %v1143_v0  ;;  %v1309_v18 = vrot.slane %v1143_v0, 4 }
 0x399   :  { %v1314_v55 = vperm.slane %v1308_v59, %v2048_v19  ;;  %v1166_v28 = vpop.f32.mrf.mxu0 }
 0x39a   :  { %v1310_v30 = vsel %vm86_vm1, %v1189_v27, %v1309_v18  ;;  %v1320_v31 = vsel %vm86_vm1, %v1319_v17, %v1166_v28  ;;  %v1321_v35 = vrot.slane %v1166_v28, 4 }
 0x39b   :  { %v1318_v7 = vperm.slane %v1310_v30, %v2048_v19  ;;  %v1333_v36 = vrot.slane %v1314_v55, 4  ;;  %v1326_v37 = vperm.slane %v1320_v31, %v2048_v19 }
 0x39c   :  { %v1322_v38 = vsel %vm86_vm1, %v1212_v16, %v1321_v35 }
 0x39d   :  { %v1345_v39 = vrot.slane %v1318_v7, 4  ;;  %v1330_v20 = vperm.slane %v1322_v38, %v2048_v19  ;;  %v1331_v41 = vrot.slane %v1326_v37, 4  ;;  %v1334_v42 = vsel %vm86_vm1, %v1326_v37, %v1333_v36 }
 0x39e   :  { %v1342_v43 = vperm.slane %v1334_v42, %v2068_v32 }
 0x39f   :  { %v1332_v45 = vsel %vm86_vm1, %v1331_v41, %v1314_v55  ;;  %v1343_v46 = vrot.slane %v1330_v20, 4  ;;  %v1346_v47 = vsel %vm86_vm1, %v1330_v20, %v1345_v39 }
 0x3a0   :  { %v1338_v50 = vperm.slane %v1332_v45, %v2068_v32  ;;  %v1354_v51 = vperm.slane %v1346_v47, %v2068_v32  ;;  %v1357_v23 = vrot.slane %v1342_v43, 4 }
 0x3a1   :  { %v1344_v57 = vsel %vm86_vm1, %v1343_v46, %v1318_v7  ;;  %v1281_v9 = vpop.f32.mrf.mxu1 }
 0x3a2   :  { %v1350_v52 = vperm.slane %v1344_v57, %v2068_v32  ;;  %v1355_v53 = vrot.slane %v1338_v50, 4  ;;  %v1358_v33 = vsel %vm86_vm1, 0.0, %v1357_v23  ;;  %v1361_v54 = vrot.slane %v1354_v51, 4 }
 0x3a3   :  { %v1419_v56 = vsel %vm86_vm1, %v1357_v23, %v1338_v50  ;;  %v1424_v22 = vrot.slane %v1358_v33, 4  ;;  %v1363_v16 = vrot.slane %v1281_v9, 4 }
 0x3a4   :  { %v1356_v58 = vsel %vm86_vm1, 0.0, %v1355_v53  ;;  %v1359_v60 = vrot.slane %v1350_v52, 4  ;;  %v1362_v61 = vsel %vm86_vm1, 0.0, %v1361_v54  ;;  %v1423_v62 = vperm.slane %v1419_v56, %v2048_v19 }
 0x3a5   :  { %v1435_v48 = vrot.slane %v1362_v61, 4  ;;  %v1425_v11 = vsel %vm86_vm1, %v1424_v22, %v1356_v58  ;;  %v1430_v21 = vsel %vm86_vm1, %v1361_v54, %v1350_v52 }
 0x3a6   :  { %v1360_v29 = vsel %vm86_vm1, 0.0, %v1359_v60  ;;  %v1429_v40 = vperm.slane %v1425_v11, %v2048_v19  ;;  %v1434_v44 = vperm.slane %v1430_v21, %v2048_v19  ;;  %v1443_v63 = vrot.slane %v1423_v62, 4 }
 0x3a7   :  { %v1436_v49 = vsel %vm86_vm1, %v1435_v48, %v1360_v29 }
 0x3a8   :  { %v1440_v24 = vperm.slane %v1436_v49, %v2048_v19  ;;  %v1444_v1 = vsel %vm86_vm1, %v1429_v40, %v1443_v63  ;;  %v1455_v2 = vrot.slane %v1434_v44, 4  ;;  %v1441_v25 = vrot.slane %v1429_v40, 4 }
 0x3a9   :  { %v1452_v26 = vperm.slane %v1444_v1, %v2068_v32 }
 0x3aa   :  { %v1456_v4 = vsel %vm86_vm1, %v1440_v24, %v1455_v2  ;;  %v1442_v10 = vsel %vm86_vm1, %v1441_v25, %v1423_v62  ;;  %v1453_v34 = vrot.slane %v1440_v24, 4 }
 0x3ab   :  { %v1464_v5 = vperm.slane %v1456_v4, %v2068_v32  ;;  %v1471_v3 = vrot.slane %v1452_v26, 4  ;;  %v1448_v8 = vperm.slane %v1442_v10, %v2068_v32 }
 0x3ac   :  { %v1454_v13 = vsel %vm86_vm1, %v1453_v34, %v1434_v44 }
 0x3ad   :  { %v1472_v14 = vsel %vm86_vm1, %v1464_v5, %v1471_v3  ;;  %v1469_v6 = vrot.slane %v1464_v5, 4  ;;  %v1460_v12 = vperm.slane %v1454_v13, %v2068_v32  ;;  %v1467_v27 = vrot.slane %v1448_v8, 4 }
 0x3ae   :  { %1545 = vrot.lane.b32.xlu0 %v1472_v14, %s1964_s1 }
 0x3af   :  { %v1470_v15 = vsel %vm86_vm1, %v1469_v6, %v1452_v26  ;;  %v1465_v0 = vrot.slane %v1460_v12, 4  ;;  %v1468_v17 = vsel %vm86_vm1, %v1460_v12, %v1467_v27 }
 0x3b0   :  { %v1235_v59 = vpop.f32.mrf.mxu3  ;;  %1537 = vrot.lane.b32.xlu1 %v1470_v15, %s1965_s12  ;;  %1529 = vrot.lane.b32.xlu2 %v1468_v17, %s1966_s13 }
 0x3b1   :  { %v1364_v18 = vsel %vm86_vm1, %v1363_v16, %v1235_v59  ;;  %v1365_v55 = vrot.slane %v1235_v59, 4  ;;  %v1304_v28 = vpop.f32.mrf.mxu2  ;;  %v2511_v30 = vsel %vm86_vm1, %v1465_v0, %v1448_v8 }
 0x3b2   :  { %v1370_v31 = vperm.slane %v1364_v18, %v2048_v19  ;;  %v1375_v35 = vrot.slane %v1304_v28, 4  ;;  %v1258_v7 = vpop.f32.mrf.mxu0 }
 0x3b3   :  { %v1366_v36 = vsel %vm86_vm1, %v1281_v9, %v1365_v55  ;;  %v1377_v37 = vrot.slane %v1258_v7, 4  ;;  %v1561_v55 = vld [vmem:[%s2664_s3 + $0x10] sm:$0xff] }
 0x3b4   :  { %v1374_v38 = vperm.slane %v1366_v36, %v2048_v19  ;;  %v1389_v39 = vrot.slane %v1370_v31, 4  ;;  %v1376_v20 = vsel %vm86_vm1, %v1375_v35, %v1258_v7 }
 0x3b5   :  { %v1378_v41 = vsel %vm86_vm1, %v1304_v28, %v1377_v37  ;;  %v1382_v42 = vperm.slane %v1376_v20, %v2048_v19  ;;  %v1560_v28 = vld [vmem:[%s2664_s3 + $0x8] sm:$0xff] }
 0x3b6   :  { %v1401_v43 = vrot.slane %v1374_v38, 4  ;;  %v1386_v45 = vperm.slane %v1378_v41, %v2048_v19 }
 0x3b7   :  { %v1387_v46 = vrot.slane %v1382_v42, 4  ;;  %v1390_v47 = vsel %vm86_vm1, %v1382_v42, %v1389_v39 }
 0x3b8   :  { %v1398_v50 = vperm.slane %v1390_v47, %v2068_v32  ;;  %v1399_v51 = vrot.slane %v1386_v45, 4  ;;  %v1402_v23 = vsel %vm86_vm1, %v1386_v45, %v1401_v43  ;;  %v1880_v47 = vld [vmem:[%s2667_s6 + $0x2] ss:$0 sm:$0xff] }
 0x3b9   :  { %v1388_v57 = vsel %vm86_vm1, %v1387_v46, %v1370_v31  ;;  %v1410_v52 = vperm.slane %v1402_v23, %v2068_v32  ;;  %v1559_v31 = vld [vmem:[%s2664_s3] sm:$0xff] }
 0x3ba   :  { %v1394_v53 = vperm.slane %v1388_v57, %v2068_v32  ;;  %v1400_v33 = vsel %vm86_vm1, %v1399_v51, %v1374_v38  ;;  %v1413_v54 = vrot.slane %v1398_v50, 4  ;;  %v1929_v51 = vld [vmem:[%s2661_s0] sm:$0xff] }
 0x3bb   :  { %v1406_v56 = vperm.slane %v1400_v33, %v2068_v32  ;;  %v1417_v22 = vrot.slane %v1410_v52, 4  ;;  %v1930_v33 = vld [vmem:[%s2661_s0 + $0x8] sm:$0xff] }
 0x3bc   :  { %v1411_v58 = vrot.slane %v1394_v53, 4  ;;  %v1414_v60 = vsel %vm86_vm1, 0.0, %v1413_v54  ;;  %v1473_v61 = vsel %vm86_vm1, %v1413_v54, %v1394_v53 }
 0x3bd   :  { %v1415_v62 = vrot.slane %v1406_v56, 4  ;;  %v1418_v48 = vsel %vm86_vm1, 0.0, %v1417_v22  ;;  %v1477_v11 = vperm.slane %v1473_v61, %v2048_v19  ;;  %v1478_v21 = vrot.slane %v1414_v60, 4 }
 0x3be   :  { %v1412_v29 = vsel %vm86_vm1, 0.0, %v1411_v58  ;;  %v1489_v40 = vrot.slane %v1418_v48, 4  ;;  %v1484_v44 = vsel %vm86_vm1, %v1417_v22, %v1406_v56  ;;  %v1967_v22 = vmov 32.0  }
 0x3bf   :  { %v1416_v63 = vsel %vm86_vm1, 0.0, %v1415_v62  ;;  %v1479_v49 = vsel %vm86_vm1, %v1478_v21, %v1412_v29  ;;  %v1488_v24 = vperm.slane %v1484_v44, %v2048_v19  ;;  %v1497_v1 = vrot.slane %v1477_v11, 4 }
 0x3c0   :  { %v1483_v2 = vperm.slane %v1479_v49, %v2048_v19  ;;  %v1490_v25 = vsel %vm86_vm1, %v1489_v40, %v1416_v63  ;;  %1919 = vrcp.f32 %v1967_v22  ;;  %v1884_v22 = vld [vmem:[%s2667_s6 + $0x3] ss:$0 sm:$0xff] }
 0x3c1   :  { %v1494_v26 = vperm.slane %v1490_v25, %v2048_v19  ;;  %v1509_v4 = vrot.slane %v1488_v24, 4 }
 0x3c2   :  { %v1498_v10 = vsel %vm86_vm1, %v1483_v2, %v1497_v1  ;;  %v1495_v34 = vrot.slane %v1483_v2, 4 }
 0x3c3   :  { %v1506_v5 = vperm.slane %v1498_v10, %v2068_v32  ;;  %v1510_v3 = vsel %vm86_vm1, %v1494_v26, %v1509_v4  ;;  %v1507_v8 = vrot.slane %v1494_v26, 4  ;;  %v1658_v26 = vld [vmem:[%s2665_s4 + $0x18] sm:$0xff]  ;;  %v1657_v4 = vld [vmem:[%s2665_s4 + $0x10] sm:$0xff]  ;;  %v1656_v10 = vld [vmem:[%s2665_s4 + $0x8] sm:$0xff] }
 0x3c4   :  { %v1518_v9 = vperm.slane %v1510_v3, %v2068_v32  ;;  %v1496_v13 = vsel %vm86_vm1, %v1495_v34, %v1477_v11  ;;  %1679 = vmatpush.msrb.mxu0 %v1658_v26  ;;  %v1655_v34 = vld [vmem:[%s2665_s4] sm:$0xff] }
 0x3c5   :  { %v1525_v14 = vrot.slane %v1506_v5, 4  ;;  %v1502_v6 = vperm.slane %v1496_v13, %v2068_v32  ;;  %v1508_v12 = vsel %vm86_vm1, %v1507_v8, %v1488_v24 }
 0x3c6   :  { %v1523_v27 = vrot.slane %v1518_v9, 4  ;;  %v1514_v19 = vperm.slane %v1508_v12, %v2068_v32  ;;  %v1562_v32 = vld [vmem:[%s2664_s3 + $0x18] sm:$0xff]  ;;  %v1920_v58 = vpop.eup %1919  ;;  %1680 = vmatpush.msrb.mxu0 %v1657_v4 }
 0x3c7   :  { %v1526_v16 = vsel %vm86_vm1, %v1518_v9, %v1525_v14  ;;  %v1521_v15 = vrot.slane %v1502_v6, 4  ;;  %1583 = vmatpush.msra.mxu3 %v1562_v32  ;;  %v1603_v60 = vmul.f32 32.0, %v1920_v58  ;;  %vm1607_vm5 = vweird.f32 %v1920_v58 }
 0x3c8   :  { %1547 = vrot.lane.b32.xlu1 %v1526_v16, %s1964_s1  ;;  %v1524_v0 = vsel %vm86_vm1, %v1523_v27, %v1506_v5  ;;  %v1519_v17 = vrot.slane %v1514_v19, 4  ;;  %1681 = vmatpush.msrb.mxu0 %v1656_v10  ;;  %s1794_s1 = sshll.u32 %s2668_s7, 4  ;;  %s1795_s1 = int_to_ptr.hbm [resolvable:$true] %s1794_s1 }
 0x3c9   :  { %1539 = vrot.lane.b32.xlu0 %v1524_v0, %s1965_s12  ;;  %v1522_v59 = vsel %vm86_vm1, %v1514_v19, %v1521_v15  ;;  %1584 = vmatpush.msra.mxu3 %v1561_v55  ;;  %v1604_v61 = vsub.f32 1.0, %v1603_v60  ;;  %v1881_v19 = vld [vmem:[%s2667_s6 + $0x4] ss:$0 sm:$0xff]  ;;  %v1699_v15 = vld [vmem:[%s2666_s5 + $0x38] sm:$0xff]  ;;  %v1698_v0 = vld [vmem:[%s2666_s5 + $0x30] sm:$0xff]  ;;  %s1969_s12 = smov 128  }
 0x3ca   :  { %1531 = vrot.lane.b32.xlu2 %v1522_v59, %s1966_s13  ;;  %v1520_v18 = vsel %vm86_vm1, %v1519_v17, %v1502_v6  ;;  %1682 = vmatpush.msrb.mxu0 %v1655_v34  ;;  %v1882_v59 = vld [vmem:[%s2667_s6 + $0x5] ss:$0 sm:$0xff] }
 0x3cb   :  { %1585 = vmatpush.msra.mxu3 %v1560_v28  ;;  %v1605_v62 = vmul.f32 %v1920_v58, %v1604_v61  ;;  %1717 = vmatpush.msra.mxu1 %v1699_v15  ;;  %v1886_v15 = vld [vmem:[%s2667_s6 + $0x7] ss:$0 sm:$0xff] }
 0x3cd   :  { %1586 = vmatpush.msra.mxu3 %v1559_v31  ;;  %v1606_v48 = vadd.f32 %v1920_v58, %v1605_v62  ;;  %1718 = vmatpush.msra.mxu1 %v1698_v0  ;;  %v1696_v31 = vld [vmem:[%s2666_s5 + $0x20] sm:$0xff] }
 0x3cf   :  { %v2583_v11 = vsel %vm1607_vm5, %v1920_v58, %v1606_v48 }
 0x40a   :  { %v1530_v35 = vpop.permute.xlu2 %1529 }
 0x40b   :  { %v1551_v7 = vsel %vm826_vm2, %v2511_v30, %v1530_v35 }
 0x420   :  { %v1546_v37 = vpop.permute.xlu0 %1545 }
 0x422   :  { %v1538_v36 = vpop.permute.xlu1 %1537 }
 0x423   :  { %v1554_v38 = vsel %vm1553_vm3, %v1551_v7, %v1538_v36  ;;  %v1695_v36 = vld [vmem:[%s2666_s5 + $0x18] sm:$0xff] }
 0x424   :  { %v1557_v39 = vsel %vm1556_vm4, %v1554_v38, %v1546_v37  ;;  %v1532_v20 = vpop.permute.xlu2 %1531 }
 0x425   :  { %1832 = vmatmul.msk.f32.vlgmr.msra.gmra.mxu3 %vm35_vm0, %v1557_v39  ;;  %v1552_v41 = vsel %vm826_vm2, %v1520_v18, %v1532_v20  ;;  %v1697_v18 = vld [vmem:[%s2666_s5 + $0x28] sm:$0xff] }
 0x426   :  { %1719 = vmatpush.msra.mxu1 %v1697_v18 }
 0x428   :  { %1720 = vmatpush.msra.mxu1 %v1696_v31 }
 0x42a   :  { %1721 = vmatpush.msra.mxu1 %v1695_v36 }
 0x43a   :  { %v1548_v43 = vpop.permute.xlu1 %1547 }
 0x43b   :  { %v1540_v42 = vpop.permute.xlu0 %1539 }
 0x43c   :  { %v1555_v45 = vsel %vm1553_vm3, %v1552_v41, %v1540_v42 }
 0x43d   :  { %v1558_v46 = vsel %vm1556_vm4, %v1555_v45, %v1548_v43 }
 0x43e   :  { %1833 = vmatmul.msk.f32.gmra.mxu3 %vm35_vm0, %v1558_v46 }
 0x4a8   :  { %v1588_v30 = vpop.f32.mrf.mxu3 }
 0x4a9   :  { %v1589_v50 = vadd.f32 %v1880_v47, %v1588_v30  ;;  %v1694_v30 = vld [vmem:[%s2666_s5 + $0x10] sm:$0xff] }
 0x4aa   :  { %1722 = vmatpush.msra.mxu1 %v1694_v30 }
 0x4ab   :  { %v1594_v23 = vadd.f32 %v1929_v51, %v1589_v50  ;;  %v1693_v50 = vld [vmem:[%s2666_s5 + $0x8] sm:$0xff]  ;;  %v1692_v51 = vld [vmem:[%s2666_s5] sm:$0xff] }
 0x4ac   :  { %1723 = vmatpush.msra.mxu1 %v1693_v50 }
 0x4ad   :  { %v1596_v57 = vsel %vm35_vm0, %v1594_v23, 0.0 }
 0x4ae   :  { %1597 = vadd.xlane.f32.xlu2 %v1596_v57  ;;  %1724 = vmatpush.msra.mxu1 %v1692_v51 }
 0x4c1   :  { %v1591_v52 = vpop.f32.mrf.mxu3 }
 0x4c2   :  { %v1592_v53 = vadd.f32 %v1880_v47, %v1591_v52 }
 0x4c4   :  { %v1595_v54 = vadd.f32 %v1930_v33, %v1592_v53 }
 0x4c6   :  { %v1599_v56 = vsel %vm35_vm0, %v1595_v54, 0.0 }
 0x4c7   :  { %1600 = vadd.xlane.f32.xlu0 %v1599_v56 }
 0x521   :  { %v1598_v21 = vpop.xlane.xlu2 %1597 }
 0x522   :  { %v1609_v29 = vmul.f32 %v2583_v11, %v1598_v21 }
 0x524   :  { %v1611_v40 = vsub.f32 %v1594_v23, %v1609_v29  ;;  %v1883_v23 = vld [vmem:[%s2667_s6 + $0x1] ss:$0 sm:$0xff] }
 0x526   :  { %v1613_v44 = vmul.f32 %v1611_v40, %v1611_v40 }
 0x528   :  { %v1615_v63 = vsel %vm35_vm0, %v1613_v44, 0.0 }
 0x529   :  { %1616 = vadd.xlane.f32.xlu1 %v1615_v63 }
 0x53a   :  { %v1601_v49 = vpop.xlane.xlu0 %1600 }
 0x53b   :  { %v1610_v24 = vmul.f32 %v2583_v11, %v1601_v49 }
 0x53d   :  { %v1612_v1 = vsub.f32 %v1595_v54, %v1610_v24 }
 0x53f   :  { %v1614_v2 = vmul.f32 %v1612_v1, %v1612_v1 }
 0x541   :  { %v1618_v25 = vsel %vm35_vm0, %v1614_v2, 0.0 }
 0x542   :  { %1619 = vadd.xlane.f32.xlu2 %v1618_v25 }
 0x59c   :  { %v1617_v5 = vpop.xlane.xlu1 %1616 }
 0x59d   :  { %v1621_v3 = vmul.f32 %v1617_v5, %v2583_v11 }
 0x59f   :  { %v1623_v8 = vadd.f32 1e-05, %v1621_v3 }
 0x5a1   :  { %1921 = vrsqrt.f32 %v1623_v8  ;;  %vm1631_vm7 = vweird.f32 %v1623_v8 }
 0x5a7   :  { %v1922_v9 = vpop.eup %1921 }
 0x5a8   :  { %v1626_v13 = vmul.f32 %v1922_v9, %v1623_v8  ;;  %vm1632_vm6 = vweird.f32 %v1922_v9 }
 0x5a9   :  { %vm1633_vm8 = vmor %vm1631_vm7, %vm1632_vm6 }
 0x5aa   :  { %v1627_v14 = vmul.f32 %v1922_v9, %v1626_v13 }
 0x5ac   :  { %v1628_v6 = vmul.f32 0.5, %v1627_v14 }
 0x5ae   :  { %v1629_v12 = vsub.f32 1.5, %v1628_v6 }
 0x5b0   :  { %v1630_v27 = vmul.f32 %v1922_v9, %v1629_v12 }
 0x5b2   :  { %v1634_v16 = vsel %vm1633_vm8, %v1922_v9, %v1630_v27  ;;  %v1885_v27 = vld [vmem:[%s2667_s6 + $0x6] ss:$0 sm:$0xff]  ;;  %s1968_s6 = smov [#allocation2]  }
 0x5b3   :  { %v1645_v17 = vmul.f32 %v1634_v16, %v1611_v40  ;;  %s1792_s10 = sshll.u32 %s1968_s6, 4  ;;  %s1793_s10 = int_to_ptr.vmem [resolvable:$true] %s1792_s10 }
 0x5b5   :  { %v1649_v32 = vmul.f32 %v1881_v19, %v1645_v17  ;;  %v1620_v55 = vpop.xlane.xlu2 %1619 }
 0x5b6   :  { %v1622_v28 = vmul.f32 %v1620_v55, %v2583_v11 }
 0x5b7   :  { %v1653_v35 = vadd.f32 %v1882_v59, %v1649_v32 }
 0x5b8   :  { %v1624_v7 = vadd.f32 1e-05, %v1622_v28 }
 0x5b9   :  { %1834 = vmatmul.msk.f32.vlgmr.msrb.gmra.mxu0 %vm35_vm0, %v1653_v35 }
 0x5ba   :  { %1923 = vrsqrt.f32 %v1624_v7  ;;  %vm1641_vm10 = vweird.f32 %v1624_v7 }
 0x5c0   :  { %v1924_v37 = vpop.eup %1923 }
 0x5c1   :  { %v1636_v38 = vmul.f32 %v1924_v37, %v1624_v7  ;;  %vm1642_vm9 = vweird.f32 %v1924_v37 }
 0x5c2   :  { %vm1643_vm11 = vmor %vm1641_vm10, %vm1642_vm9 }
 0x5c3   :  { %v1637_v39 = vmul.f32 %v1924_v37, %v1636_v38 }
 0x5c5   :  { %v1638_v20 = vmul.f32 0.5, %v1637_v39 }
 0x5c7   :  { %v1639_v41 = vsub.f32 1.5, %v1638_v20 }
 0x5c9   :  { %v1640_v42 = vmul.f32 %v1924_v37, %v1639_v41 }
 0x5cb   :  { %v1644_v43 = vsel %vm1643_vm11, %v1924_v37, %v1640_v42 }
 0x5cc   :  { %v1646_v45 = vmul.f32 %v1644_v43, %v1612_v1 }
 0x5ce   :  { %v1650_v46 = vmul.f32 %v1881_v19, %v1646_v45 }
 0x5d0   :  { %v1654_v47 = vadd.f32 %v1882_v59, %v1650_v46 }
 0x5d2   :  { %1835 = vmatmul.msk.f32.gmra.mxu0 %vm35_vm0, %v1654_v47 }
 0x636   :  { %v1684_v57 = vpop.f32.mrf.mxu0 }
 0x637   :  { %v1685_v52 = vadd.f32 %v1883_v23, %v1684_v57 }
 0x639   :  { %v1690_v53 = vmax.f32 %v1685_v52, 0.0 }
 0x63b   :  { %1836 = vmatmul.msk.f32.vlgmr.msra.gmra.mxu1 %vm1702_vm12, %v1690_v53 }
 0x64f   :  { %v1687_v33 = vpop.f32.mrf.mxu0 }
 0x650   :  { %v1688_v54 = vadd.f32 %v1883_v23, %v1687_v33 }
 0x652   :  { %v1691_v56 = vmax.f32 %v1688_v54, 0.0 }
 0x654   :  { %1837 = vmatmul.msk.f32.gmra.mxu1 %vm1702_vm12, %v1691_v56 }
 0x6b8   :  { %v1726_v58 = vpop.f32.mrf.mxu1 }
 0x6b9   :  { %v1727_v60 = vadd.f32 %v1884_v22, %v1726_v58 }
 0x6bb   :  { %v1732_v61 = vadd.f32 %v1727_v60, %v1653_v35 }
 0x6bd   :  { %v1734_v62 = vsel %vm35_vm0, %v1732_v61, 0.0 }
 0x6be   :  { %1735 = vadd.xlane.f32.xlu0 %v1734_v62 }
 0x6d1   :  { %v1729_v48 = vpop.f32.mrf.mxu1 }
 0x6d2   :  { %v1730_v21 = vadd.f32 %v1884_v22, %v1729_v48 }
 0x6d4   :  { %v1733_v29 = vadd.f32 %v1730_v21, %v1654_v47 }
 0x6d6   :  { %v1737_v40 = vsel %vm35_vm0, %v1733_v29, 0.0 }
 0x6d7   :  { %1738 = vadd.xlane.f32.xlu1 %v1737_v40 }
 0x731   :  { %v1736_v44 = vpop.xlane.xlu0 %1735 }
 0x732   :  { %v1740_v63 = vmul.f32 %v1736_v44, %v2583_v11 }
 0x734   :  { %v1742_v49 = vsub.f32 %v1732_v61, %v1740_v63 }
 0x736   :  { %v1744_v24 = vmul.f32 %v1742_v49, %v1742_v49 }
 0x738   :  { %v1746_v1 = vsel %vm35_vm0, %v1744_v24, 0.0 }
 0x739   :  { %1747 = vadd.xlane.f32.xlu2 %v1746_v1 }
 0x74a   :  { %v1739_v2 = vpop.xlane.xlu1 %1738 }
 0x74b   :  { %v1741_v25 = vmul.f32 %v1739_v2, %v2583_v11 }
 0x74d   :  { %v1743_v26 = vsub.f32 %v1733_v29, %v1741_v25 }
 0x74f   :  { %v1745_v4 = vmul.f32 %v1743_v26, %v1743_v26 }
 0x751   :  { %v1749_v10 = vsel %vm35_vm0, %v1745_v4, 0.0 }
 0x752   :  { %1750 = vadd.xlane.f32.xlu0 %v1749_v10 }
 0x7ac   :  { %v1748_v34 = vpop.xlane.xlu2 %1747 }
 0x7ad   :  { %v1752_v5 = vmul.f32 %v1748_v34, %v2583_v11 }
 0x7af   :  { %v1754_v3 = vadd.f32 1e-05, %v1752_v5 }
 0x7b1   :  { %1925 = vrsqrt.f32 %v1754_v3  ;;  %vm1762_vm14 = vweird.f32 %v1754_v3 }
 0x7b7   :  { %v1926_v8 = vpop.eup %1925 }
 0x7b8   :  { %v1757_v9 = vmul.f32 %v1926_v8, %v1754_v3  ;;  %vm1763_vm13 = vweird.f32 %v1926_v8 }
 0x7b9   :  { %vm1764_vm15 = vmor %vm1762_vm14, %vm1763_vm13 }
 0x7ba   :  { %v1758_v13 = vmul.f32 %v1926_v8, %v1757_v9 }
 0x7bc   :  { %v1759_v14 = vmul.f32 0.5, %v1758_v13 }
 0x7be   :  { %v1760_v6 = vsub.f32 1.5, %v1759_v14 }
 0x7c0   :  { %v1761_v12 = vmul.f32 %v1926_v8, %v1760_v6 }
 0x7c2   :  { %v1765_v19 = vsel %vm1764_vm15, %v1926_v8, %v1761_v12 }
 0x7c3   :  { %v1776_v16 = vmul.f32 %v1765_v19, %v1742_v49 }
 0x7c5   :  { %v1780_v0 = vmul.f32 %v1885_v27, %v1776_v16  ;;  %v1751_v17 = vpop.xlane.xlu0 %1750 }
 0x7c6   :  { %v1753_v59 = vmul.f32 %v1751_v17, %v2583_v11 }
 0x7c7   :  { %v1784_v18 = vadd.f32 %v1886_v15, %v1780_v0 }
 0x7c8   :  { %v1755_v32 = vadd.f32 1e-05, %v1753_v59 }
 0x7c9   :  { %1786 = vst.msk [vmem:[#allocation2] sm:$0xff] %vm35_vm0, %v1784_v18 }
 0x7ca   :  { %1927 = vrsqrt.f32 %v1755_v32  ;;  %vm1772_vm2 = vweird.f32 %v1755_v32 }
 0x7d0   :  { %v1928_v55 = vpop.eup %1927 }
 0x7d1   :  { %v1767_v28 = vmul.f32 %v1928_v55, %v1755_v32  ;;  %vm1773_vm1 = vweird.f32 %v1928_v55 }
 0x7d2   :  { %vm1774_vm3 = vmor %vm1772_vm2, %vm1773_vm1 }
 0x7d3   :  { %v1768_v31 = vmul.f32 %v1928_v55, %v1767_v28 }
 0x7d5   :  { %v1769_v35 = vmul.f32 0.5, %v1768_v31 }
 0x7d7   :  { %v1770_v7 = vsub.f32 1.5, %v1769_v35 }
 0x7d9   :  { %v1771_v36 = vmul.f32 %v1928_v55, %v1770_v7 }
 0x7db   :  { %v1775_v37 = vsel %vm1774_vm3, %v1928_v55, %v1771_v36 }
 0x7dc   :  { %v1777_v38 = vmul.f32 %v1775_v37, %v1743_v26 }
 0x7de   :  { %v1781_v11 = vmul.f32 %v1885_v27, %v1777_v38 }
 0x7e0   :  { %v1785_v39 = vadd.f32 %v1886_v15, %v1781_v11 }
 0x7e2   :  { %1787 = vst.msk [vmem:[#allocation2 + $0x8] sm:$0xff] %vm35_vm0, %v1785_v39 }
 0x7e3   :  { %1800 = dma.vmem_to_hbm [thread:$0]  %s1793_s10, 256, %s1795_s1, [#allocation3], %s1969_s12, %s1969_s12, %s1966_s13  }
 0x7e4   :  { %1955 = dma.done.wait [#allocation3], 256  }
 0x7e5   :  { %1956 = vsyncadd [#allocation3], 4294967040 }
 0x7e6   :  { %1805 = vsyncpa [#allocation3], 1 }

</bundles_post_ra>
